<compile_context>
chip_gen: v7x
topology: tpu7x:2x2x1
jax: 0.10.0
libtpu: 0.0.40
codegen_flags: <defaults>
</compile_context>

<pallas_src>
from math import exp

import jax
import jax.numpy as jnp
import numpy as np
from jax.experimental import pallas as pl
from jax.experimental.pallas import tpu as pltpu

WIN = 11          # pytorch_ssim default window size
SIGMA = 1.5       # pytorch_ssim default sigma
PAD = WIN // 2    # conv padding
C1 = 0.01 ** 2
C2 = 0.03 ** 2

_VMEM_LIMIT_BYTES = 32 * 1024 * 1024
# Per-block live f32 working set is roughly ~16-18 copies of the (tile_bc, H, W)
# tile; keeping the tile <= 128K elements (~8-9 MiB live) fits the scoped VMEM
# limit comfortably on every generation (v5e/v6e 128 MiB physical, v7x 64 MiB).
_MAX_TILE_ELEMS = 128 * 1024
# Also bound the broadcasted (tile_bc, H, H) band matrix (guards tall-skinny
# images where H >> W).
_MAX_BCAST_ELEMS = 256 * 1024


def _gauss_1d():
    g = [exp(-((i - WIN // 2) ** 2) / (2.0 * SIGMA ** 2)) for i in range(WIN)]
    s = sum(g)
    return [v / s for v in g]


def _band_matrix(n):
    """(n, n) matrix M with M[i, j] = g[j - i + PAD]; M @ v is the 11-tap
    Gaussian conv of v with zero padding (== F.conv2d(..., padding=5) per
    axis).  The Gaussian is symmetric, so M is symmetric."""
    g = _gauss_1d()
    m = np.zeros((n, n), dtype=np.float32)
    for i in range(n):
        for t in range(WIN):
            j = i + t - PAD
            if 0 <= j < n:
                m[i, j] = g[t]
    return jnp.asarray(m)


def _largest_divisor_leq(n, cap):
    cap = max(1, min(n, cap))
    for d in range(cap, 0, -1):
        if n % d == 0:
            return d
    return 1


def _unwarp_loss_kernel(x_ref, y_ref, mh_ref, mw_ref, mse_ref, ssim_ref):
    x = x_ref[...].astype(jnp.float32)          # (tb, H, W)
    y = y_ref[...].astype(jnp.float32)
    tb, H, W = x.shape

    # ---- MSE partial sum (zero padding is baked into the band matrices, so
    # the full tile is valid data and no slicing is needed) ----
    d = x - y
    mse_p = jnp.sum(d * d)

    # ---- depthwise separable Gaussian conv on the MXU ----
    # Hoisted once and reused by all four convolutions.
    mh_b = jnp.broadcast_to(mh_ref[...], (tb, H, H))
    mw = mw_ref[...]

    def conv(img3):                                    # img3: (tb, H, W)
        # H axis: per-channel (H,H) @ (H,W) batched matmul (zero-pad baked in).
        t = jnp.einsum('bij,bjw->biw', mh_b, img3,
                       preferred_element_type=jnp.float32)
        # W axis: one flat (tb*H, W) @ (W, W) matmul (Wmat is symmetric).
        return jnp.dot(t.reshape(tb * H, W), mw,
                       preferred_element_type=jnp.float32)   # (tb*H, W)

    mu1 = conv(x)
    mu2 = conv(y)
    e_xy = conv(x * y)
    e_ss = conv(x * x + y * y)     # = sigma1_sq + sigma2_sq + mu1^2 + mu2^2

    mu1_sq = mu1 * mu1
    mu2_sq = mu2 * mu2
    mu1_mu2 = mu1 * mu2
    mu_sum_sq = mu1_sq + mu2_sq
    sigma12 = e_xy - mu1_mu2

    num = (2.0 * mu1_mu2 + C1) * (2.0 * sigma12 + C2)
    den = (mu_sum_sq + C1) * (e_ss - mu_sum_sq + C2)
    ssim_p = jnp.sum(num * pl.reciprocal(den, approx=False))

    # Lane-dense (8, 128) partial-sum tiles; the wrapper reads element [0, 0].
    mse_ref[...] = jnp.full((1, 8, 128), mse_p, dtype=jnp.float32)
    ssim_ref[...] = jnp.full((1, 8, 128), ssim_p, dtype=jnp.float32)


def unwarp_loss(imgout, imggt):
    """Returns (mse, 1 - ssim) as float32 scalars. Inputs are NCHW."""
    B, C, H, W = imgout.shape
    bc = B * C
    x = imgout.reshape(bc, H, W)
    y = imggt.reshape(bc, H, W)

    cap = min(max(1, _MAX_TILE_ELEMS // (H * W)),
              max(1, _MAX_BCAST_ELEMS // (H * H)))
    tile_bc = _largest_divisor_leq(bc, cap)
    nblk = bc // tile_bc

    mh = _band_matrix(H)
    mw = _band_matrix(W)

    part_shape = jax.ShapeDtypeStruct((nblk, 8, 128), jnp.float32)
    part_spec = pl.BlockSpec((1, 8, 128), lambda i: (i, 0, 0))

    mse_part, ssim_part = pl.pallas_call(
        _unwarp_loss_kernel,
        out_shape=(part_shape, part_shape),
        grid=(nblk,),
        in_specs=[
            pl.BlockSpec((tile_bc, H, W), lambda i: (i, 0, 0)),
            pl.BlockSpec((tile_bc, H, W), lambda i: (i, 0, 0)),
            pl.BlockSpec((H, H), lambda i: (0, 0)),
            pl.BlockSpec((W, W), lambda i: (0, 0)),
        ],
        out_specs=(part_spec, part_spec),
        compiler_params=pltpu.CompilerParams(
            dimension_semantics=("parallel",),
            vmem_limit_bytes=_VMEM_LIMIT_BYTES),
    )(x, y, mh, mw)

    inv_n = 1.0 / float(bc * H * W)
    mse = jnp.sum(mse_part[:, 0, 0]) * inv_n
    dssim = 1.0 - jnp.sum(ssim_part[:, 0, 0]) * inv_n
    return mse.astype(jnp.float32), dssim.astype(jnp.float32)


def _reference(imgout, imggt):
    """Pure-JAX reference (independent 5-conv formulation, HIGHEST precision)."""
    B, C, H, W = imgout.shape
    x = imgout.reshape(B * C, H, W).astype(jnp.float32)
    y = imggt.reshape(B * C, H, W).astype(jnp.float32)
    mh = _band_matrix(H)
    mw = _band_matrix(W)
    hp = jax.lax.Precision.HIGHEST

    def conv(a):
        return jnp.einsum('ij,bjw,wk->bik', mh, a, mw, precision=hp)

    mu1, mu2 = conv(x), conv(y)
    e_x2, e_y2, e_xy = conv(x * x), conv(y * y), conv(x * y)
    mu1_sq, mu2_sq, mu1_mu2 = mu1 * mu1, mu2 * mu2, mu1 * mu2
    s1, s2, s12 = e_x2 - mu1_sq, e_y2 - mu2_sq, e_xy - mu1_mu2
    ssim_map = ((2.0 * mu1_mu2 + C1) * (2.0 * s12 + C2)) / (
        (mu1_sq + mu2_sq + C1) * (s1 + s2 + C2))
    return jnp.mean((x - y) ** 2), 1.0 - jnp.mean(ssim_map)


if __name__ == "__main__":
    key = jax.random.PRNGKey(0)
    k1, k2 = jax.random.split(key)
    imgout = jax.random.uniform(k1, (2, 4, 16, 16), dtype=jnp.float32)
    imggt = jax.random.uniform(k2, (2, 4, 16, 16), dtype=jnp.float32)

    mse, one_minus_ssim = jax.jit(unwarp_loss)(imgout, imggt)
    jax.block_until_ready((mse, one_minus_ssim))

    ref_mse, ref_dssim = _reference(imgout, imggt)

    # MSE path has no matmul: should match the f32 reference tightly.
    assert np.allclose(float(mse), float(ref_mse), rtol=1e-4, atol=1e-5), (
        float(mse), float(ref_mse))
    # SSIM path runs the Gaussian conv on the MXU (default-precision f32
    # matmuls); compare against the HIGHEST-precision reference with a
    # tolerance that covers the expected bf16-pass truncation (~few 1e-3).
    assert np.allclose(float(one_minus_ssim), float(ref_dssim),
                       rtol=1e-2, atol=1e-2), (
        float(one_minus_ssim), float(ref_dssim))
    print("KERNEL_OK")
</pallas_src>

<mosaic_0001>
module attributes {stable_mosaic.version = 11 : i64} {
  func.func @_unwarp_loss_kernel(%arg0: i32, %arg1: memref<8x16x16xf32, #tpu.memory_space<vmem>>, %arg2: memref<8x16x16xf32, #tpu.memory_space<vmem>>, %arg3: memref<16x16xf32, #tpu.memory_space<vmem>>, %arg4: memref<16x16xf32, #tpu.memory_space<vmem>>, %arg5: memref<1x8x128xf32, #tpu.memory_space<vmem>>, %arg6: memref<1x8x128xf32, #tpu.memory_space<vmem>>) attributes {dimension_semantics = [#tpu.dimension_semantics<parallel>], iteration_bounds = array<i64: 1>, scalar_prefetch = 0 : i64, scratch_operands = 0 : i64, tpu.core_type = #tpu.core_type<tc>, window_params = [{transform_indices = @transform_0, window_bounds = array<i64: 8, 16, 16>}, {transform_indices = @transform_1, window_bounds = array<i64: 8, 16, 16>}, {pipeline_mode = #tpu.pipeline_mode<synchronous>, transform_indices = @transform_2, window_bounds = array<i64: 16, 16>}, {pipeline_mode = #tpu.pipeline_mode<synchronous>, transform_indices = @transform_3, window_bounds = array<i64: 16, 16>}, {transform_indices = @transform_4, window_bounds = array<i64: 1, 8, 128>}, {transform_indices = @transform_5, window_bounds = array<i64: 1, 8, 128>}]} {
    %c0 = arith.constant 0 : index
    %c0_0 = arith.constant 0 : index
    %c0_1 = arith.constant 0 : index
    %0 = vector.load %arg1[%c0, %c0_0, %c0_1] : memref<8x16x16xf32, #tpu.memory_space<vmem>>, vector<8x16x16xf32>
    %c0_2 = arith.constant 0 : index
    %c0_3 = arith.constant 0 : index
    %c0_4 = arith.constant 0 : index
    %1 = vector.load %arg2[%c0_2, %c0_3, %c0_4] : memref<8x16x16xf32, #tpu.memory_space<vmem>>, vector<8x16x16xf32>
    %2 = arith.subf %0, %1 : vector<8x16x16xf32>
    %3 = arith.mulf %2, %2 : vector<8x16x16xf32>
    %4 = vector.shape_cast %3 : vector<8x16x16xf32> to vector<1x8x16x16xf32>
    %cst = arith.constant dense<0.000000e+00> : vector<1xf32>
    %5 = vector.multi_reduction <add>, %4, %cst [1, 2, 3] : vector<1x8x16x16xf32> to vector<1xf32>
    %6 = vector.shape_cast %5 : vector<1xf32> to vector<1x1x1x1xf32>
    %7 = vector.extract %6[0, 0, 0, 0] : f32 from vector<1x1x1x1xf32>
    %c0_5 = arith.constant 0 : index
    %c0_6 = arith.constant 0 : index
    %8 = vector.load %arg3[%c0_5, %c0_6] : memref<16x16xf32, #tpu.memory_space<vmem>>, vector<16x16xf32>
    %9 = vector.shape_cast %8 : vector<16x16xf32> to vector<1x16x16xf32>
    %10 = vector.broadcast %9 : vector<1x16x16xf32> to vector<8x16x16xf32>
    %c0_7 = arith.constant 0 : index
    %c0_8 = arith.constant 0 : index
    %11 = vector.load %arg4[%c0_7, %c0_8] : memref<16x16xf32, #tpu.memory_space<vmem>>, vector<16x16xf32>
    "tpu.trace_start"() <{level = 10 : i32, message = "bij,bjw->biw"}> : () -> ()
    %cst_9 = arith.constant dense<0.000000e+00> : vector<8x16x16xf32>
    %12 = tpu.matmul %10, %0, %cst_9 {dimension_numbers = #tpu.dot_dimension_numbers<[2], [1], [1], [2], [0, 0, 0, 1, 1, 2], [0], [0]>} : vector<8x16x16xf32>, vector<8x16x16xf32>, vector<8x16x16xf32> -> vector<8x16x16xf32>
    "tpu.trace_stop"() : () -> ()
    %13 = vector.shape_cast %12 : vector<8x16x16xf32> to vector<128x16xf32>
    %cst_10 = arith.constant dense<0.000000e+00> : vector<128x16xf32>
    %14 = tpu.matmul %13, %11, %cst_10 {dimension_numbers = #tpu.dot_dimension_numbers<[1], [0], [0], [1], [0, 0, 1, 1], [], []>} : vector<128x16xf32>, vector<16x16xf32>, vector<128x16xf32> -> vector<128x16xf32>
    "tpu.trace_start"() <{level = 10 : i32, message = "bij,bjw->biw"}> : () -> ()
    %cst_11 = arith.constant dense<0.000000e+00> : vector<8x16x16xf32>
    %15 = tpu.matmul %10, %1, %cst_11 {dimension_numbers = #tpu.dot_dimension_numbers<[2], [1], [1], [2], [0, 0, 0, 1, 1, 2], [0], [0]>} : vector<8x16x16xf32>, vector<8x16x16xf32>, vector<8x16x16xf32> -> vector<8x16x16xf32>
    "tpu.trace_stop"() : () -> ()
    %16 = vector.shape_cast %15 : vector<8x16x16xf32> to vector<128x16xf32>
    %cst_12 = arith.constant dense<0.000000e+00> : vector<128x16xf32>
    %17 = tpu.matmul %16, %11, %cst_12 {dimension_numbers = #tpu.dot_dimension_numbers<[1], [0], [0], [1], [0, 0, 1, 1], [], []>} : vector<128x16xf32>, vector<16x16xf32>, vector<128x16xf32> -> vector<128x16xf32>
    %18 = arith.mulf %0, %1 : vector<8x16x16xf32>
    "tpu.trace_start"() <{level = 10 : i32, message = "bij,bjw->biw"}> : () -> ()
    %cst_13 = arith.constant dense<0.000000e+00> : vector<8x16x16xf32>
    %19 = tpu.matmul %10, %18, %cst_13 {dimension_numbers = #tpu.dot_dimension_numbers<[2], [1], [1], [2], [0, 0, 0, 1, 1, 2], [0], [0]>} : vector<8x16x16xf32>, vector<8x16x16xf32>, vector<8x16x16xf32> -> vector<8x16x16xf32>
    "tpu.trace_stop"() : () -> ()
    %20 = vector.shape_cast %19 : vector<8x16x16xf32> to vector<128x16xf32>
    %cst_14 = arith.constant dense<0.000000e+00> : vector<128x16xf32>
    %21 = tpu.matmul %20, %11, %cst_14 {dimension_numbers = #tpu.dot_dimension_numbers<[1], [0], [0], [1], [0, 0, 1, 1], [], []>} : vector<128x16xf32>, vector<16x16xf32>, vector<128x16xf32> -> vector<128x16xf32>
    %22 = arith.mulf %0, %0 : vector<8x16x16xf32>
    %23 = arith.mulf %1, %1 : vector<8x16x16xf32>
    %24 = arith.addf %22, %23 : vector<8x16x16xf32>
    "tpu.trace_start"() <{level = 10 : i32, message = "bij,bjw->biw"}> : () -> ()
    %cst_15 = arith.constant dense<0.000000e+00> : vector<8x16x16xf32>
    %25 = tpu.matmul %10, %24, %cst_15 {dimension_numbers = #tpu.dot_dimension_numbers<[2], [1], [1], [2], [0, 0, 0, 1, 1, 2], [0], [0]>} : vector<8x16x16xf32>, vector<8x16x16xf32>, vector<8x16x16xf32> -> vector<8x16x16xf32>
    "tpu.trace_stop"() : () -> ()
    %26 = vector.shape_cast %25 : vector<8x16x16xf32> to vector<128x16xf32>
    %cst_16 = arith.constant dense<0.000000e+00> : vector<128x16xf32>
    %27 = tpu.matmul %26, %11, %cst_16 {dimension_numbers = #tpu.dot_dimension_numbers<[1], [0], [0], [1], [0, 0, 1, 1], [], []>} : vector<128x16xf32>, vector<16x16xf32>, vector<128x16xf32> -> vector<128x16xf32>
    %28 = arith.mulf %14, %14 : vector<128x16xf32>
    %29 = arith.mulf %17, %17 : vector<128x16xf32>
    %30 = arith.mulf %14, %17 : vector<128x16xf32>
    %31 = arith.addf %28, %29 : vector<128x16xf32>
    %32 = arith.subf %21, %30 : vector<128x16xf32>
    %cst_17 = arith.constant 2.000000e+00 : f32
    %33 = vector.broadcast %cst_17 : f32 to vector<128x16xf32>
    %34 = arith.mulf %33, %30 : vector<128x16xf32>
    %cst_18 = arith.constant 9.99999974E-5 : f32
    %35 = vector.broadcast %cst_18 : f32 to vector<128x16xf32>
    %36 = arith.addf %34, %35 : vector<128x16xf32>
    %cst_19 = arith.constant 2.000000e+00 : f32
    %37 = vector.broadcast %cst_19 : f32 to vector<128x16xf32>
    %38 = arith.mulf %37, %32 : vector<128x16xf32>
    %cst_20 = arith.constant 8.99999984E-4 : f32
    %39 = vector.broadcast %cst_20 : f32 to vector<128x16xf32>
    %40 = arith.addf %38, %39 : vector<128x16xf32>
    %41 = arith.mulf %36, %40 : vector<128x16xf32>
    %cst_21 = arith.constant 9.99999974E-5 : f32
    %42 = vector.broadcast %cst_21 : f32 to vector<128x16xf32>
    %43 = arith.addf %31, %42 : vector<128x16xf32>
    %44 = arith.subf %27, %31 : vector<128x16xf32>
    %cst_22 = arith.constant 8.99999984E-4 : f32
    %45 = vector.broadcast %cst_22 : f32 to vector<128x16xf32>
    %46 = arith.addf %44, %45 : vector<128x16xf32>
    %47 = arith.mulf %43, %46 : vector<128x16xf32>
    %48 = tpu.reciprocal %47 : vector<128x16xf32> -> vector<128x16xf32>
    %49 = arith.mulf %41, %48 : vector<128x16xf32>
    %50 = vector.shape_cast %49 : vector<128x16xf32> to vector<1x128x16xf32>
    %cst_23 = arith.constant dense<0.000000e+00> : vector<1xf32>
    %51 = vector.multi_reduction <add>, %50, %cst_23 [1, 2] : vector<1x128x16xf32> to vector<1xf32>
    %52 = vector.shape_cast %51 : vector<1xf32> to vector<1x1x1xf32>
    %53 = vector.extract %52[0, 0, 0] : f32 from vector<1x1x1xf32>
    %54 = vector.broadcast %7 : f32 to vector<1x8x128xf32>
    %c0_24 = arith.constant 0 : index
    %c0_25 = arith.constant 0 : index
    %c0_26 = arith.constant 0 : index
    %55 = vector.load %arg5[%c0_24, %c0_25, %c0_26] : memref<1x8x128xf32, #tpu.memory_space<vmem>>, vector<1x8x128xf32>
    tpu.vector_store %arg5[%c0_24, %c0_25, %c0_26], %54 {strides = array<i32>} : memref<1x8x128xf32, #tpu.memory_space<vmem>>, vector<1x8x128xf32>,
    %56 = vector.broadcast %53 : f32 to vector<1x8x128xf32>
    %c0_27 = arith.constant 0 : index
    %c0_28 = arith.constant 0 : index
    %c0_29 = arith.constant 0 : index
    %57 = vector.load %arg6[%c0_27, %c0_28, %c0_29] : memref<1x8x128xf32, #tpu.memory_space<vmem>>, vector<1x8x128xf32>
    tpu.vector_store %arg6[%c0_27, %c0_28, %c0_29], %56 {strides = array<i32>} : memref<1x8x128xf32, #tpu.memory_space<vmem>>, vector<1x8x128xf32>,
    return
  }
  func.func @transform_0(%arg0: i32) -> (i32, i32, i32) {
    %c0_i32 = arith.constant 0 : i32
    %c0_i32_0 = arith.constant 0 : i32
    %c0_i32_1 = arith.constant 0 : i32
    return %arg0, %c0_i32, %c0_i32_0 : i32, i32, i32
  }
  func.func @transform_1(%arg0: i32) -> (i32, i32, i32) {
    %c0_i32 = arith.constant 0 : i32
    %c0_i32_0 = arith.constant 0 : i32
    %c0_i32_1 = arith.constant 0 : i32
    return %arg0, %c0_i32, %c0_i32_0 : i32, i32, i32
  }
  func.func @transform_2(%arg0: i32) -> (i32, i32) {
    %c0_i32 = arith.constant 0 : i32
    %c0_i32_0 = arith.constant 0 : i32
    %c0_i32_1 = arith.constant 0 : i32
    return %c0_i32, %c0_i32_0 : i32, i32
  }
  func.func @transform_3(%arg0: i32) -> (i32, i32) {
    %c0_i32 = arith.constant 0 : i32
    %c0_i32_0 = arith.constant 0 : i32
    %c0_i32_1 = arith.constant 0 : i32
    return %c0_i32, %c0_i32_0 : i32, i32
  }
  func.func @transform_4(%arg0: i32) -> (i32, i32, i32) {
    %c0_i32 = arith.constant 0 : i32
    %c0_i32_0 = arith.constant 0 : i32
    %c0_i32_1 = arith.constant 0 : i32
    return %arg0, %c0_i32, %c0_i32_0 : i32, i32, i32
  }
  func.func @transform_5(%arg0: i32) -> (i32, i32, i32) {
    %c0_i32 = arith.constant 0 : i32
    %c0_i32_0 = arith.constant 0 : i32
    %c0_i32_1 = arith.constant 0 : i32
    return %arg0, %c0_i32, %c0_i32_0 : i32, i32, i32
  }
}

</mosaic_0001>

<bundles_post_ra>
// kernel: unwarp_loss.1
= control target key start
LH: loop header
LB: loop body
LE: loop exit
PB: predicated region body
PF: predicated region fallthrough
CT: control target
= control target key end

     0   :  { %11 = vsyncpa [#allocation3], 0  ;;  %s5413_s0 = inlined_call_operand.hbm [shape: f32[8,16,16], index: 0, kind: input, shape index: {}]   ;;  %s5414_s1 = inlined_call_operand.hbm [shape: f32[8,16,16], index: 1, kind: input, shape index: {}]   ;;  %s5415_s2 = inlined_call_operand.vmem [shape: f32[16,16], index: 2, kind: input, shape index: {}, may-alias: {2,3}]   ;;  %s5416_s3 = inlined_call_operand.vmem [shape: f32[16,16], index: 3, kind: input, shape index: {}, may-alias: {2,3}]   ;;  %s5417_s4 = inlined_call_operand.vmem [shape: f32[1,8,128], index: 4, kind: output, shape index: {0}]   ;;  %s5418_s5 = inlined_call_operand.vmem [shape: f32[1,8,128], index: 5, kind: output, shape index: {1}]  }
   0x1   :  { %12 = vsyncpa [#allocation5], 0  ;;  %s4606_s18 = smov [#allocation2]   ;;  %s4558_s22 = scalar_lea.hbm %s5413_s0, 2048 }
   0x2   :  { %s18_s19 = sshll.u32 %s4606_s18, 4  ;;  %p4559_p0 = scmp.ne.s32.totalorder %s5413_s0, %s4558_s22  ;;  %s19_s19 = int_to_ptr.vmem [resolvable:$true] %s18_s19 }
   0x3   :  { %p4562_p1 = scmp.lt.u32.totalorder %s4558_s22, %s5413_s0 }
   0x5   :  { %p4564_p2 = pnand %p4562_p1, %p4559_p0 }
   0x7   :  { %4567 = shalt.err (!%p4564_p2)
}
   0x8   :  { %s4568_s27 = scalar_lea.vmem %s19_s19, 2048  ;;  %p4573_p4 = scmp.lt.s32.totalorder %s19_s19, %s19_s19 }
   0x9   :  { %p4569_p3 = scmp.ne.s32.totalorder %s19_s19, %s4568_s27  ;;  %p4574_p5 = scmp.lt.s32.totalorder %s4568_s27, %s4568_s27 }
   0xb   :  { %p4575_p6 = por %p4574_p5, %p4573_p4 }
   0xd   :  { %p4576_p7 = pnand %p4575_p6, %p4569_p3 }
   0xf   :  { %4579 = shalt.err (!%p4576_p7)
}
  0x10   :  { %s4607_s28 = smov 128   ;;  %s4608_s29 = smov 8  }
  0x11   :  { %24 = dma.hbm_to_vmem [thread:$0]  %s5413_s0, 2048, %s19_s19, [#allocation3], %s4607_s28, %s4607_s28, %s4608_s29  }
  0x12   :  { %s4609_s7 = smov [#allocation4]   ;;  %s4580_s11 = scalar_lea.hbm %s5414_s1, 2048 }
  0x13   :  { %s30_s8 = sshll.u32 %s4609_s7, 4  ;;  %p4581_p8 = scmp.ne.s32.totalorder %s5414_s1, %s4580_s11  ;;  %s31_s8 = int_to_ptr.vmem [resolvable:$true] %s30_s8 }
  0x14   :  { %p4584_p9 = scmp.lt.u32.totalorder %s4580_s11, %s5414_s1 }
  0x16   :  { %p4586_p10 = pnand %p4584_p9, %p4581_p8 }
  0x18   :  { %4589 = shalt.err (!%p4586_p10)
}
  0x19   :  { %s4590_s16 = scalar_lea.vmem %s31_s8, 2048  ;;  %p4595_p12 = scmp.lt.s32.totalorder %s31_s8, %s31_s8 }
  0x1a   :  { %p4591_p11 = scmp.ne.s32.totalorder %s31_s8, %s4590_s16  ;;  %p4596_p13 = scmp.lt.s32.totalorder %s4590_s16, %s4590_s16 }
  0x1c   :  { %p4597_p0 = por %p4596_p13, %p4595_p12 }
  0x1e   :  { %p4598_p1 = pnand %p4597_p0, %p4591_p11 }
  0x20   :  { %4601 = shalt.err (!%p4598_p1)
}
  0x21   :  { %36 = dma.hbm_to_vmem [thread:$0]  %s5414_s1, 2048, %s31_s8, [#allocation5], %s4607_s28, %s4607_s28, %s4608_s29  }
  0x22   :  { %4602 = dma.done.wait [#allocation3], 2048  }
  0x23   :  { %4603 = vsyncadd [#allocation3], 4294965248 }
  0x24   :  { %4604 = dma.done.wait [#allocation5], 2048  }
  0x25   :  { %4605 = vsyncadd [#allocation5], 4294965248  ;;  %vm111_vm0 = vcmask 130048   ;;  %v4664_v0 = vld [vmem:[#allocation2] sm:$0xff]  ;;  %v4666_v1 = vld [vmem:[#allocation2 + $0x8] sm:$0xff] }
  0x26   :  { %v4671_v2 = vld [vmem:[%s5415_s2] sm:$0xff]  ;;  %v4372_v3 = vpack.c.bf16 %v4666_v1, %v4664_v0  ;;  %v4677_v4 = vld [vmem:[#allocation2 + $0x10] sm:$0xff]  ;;  %v4679_v5 = vld [vmem:[#allocation2 + $0x18] sm:$0xff] }
  0x27   :  { %4040 = vmatprep.mubr.msk.f32.mxu0 %vm111_vm0, %v4671_v2  ;;  %4047 = vmatprep.mubr.msk.f32.mxu1 %vm111_vm0, %v4671_v2  ;;  %v4376_v6 = vpack.c.bf16 %v4679_v5, %v4677_v4  ;;  %v4685_v7 = vld [vmem:[#allocation2 + $0x20] sm:$0xff]  ;;  %v4687_v8 = vld [vmem:[#allocation2 + $0x28] sm:$0xff]  ;;  %v4689_v9 = vld [vmem:[#allocation2 + $0x30] sm:$0xff] }
  0x28   :  { %4373 = vmatprep.subr.bf16.mxu0 %v4372_v3  ;;  %v4380_v10 = vpack.c.bf16 %v4687_v8, %v4685_v7  ;;  %v4693_v11 = vld [vmem:[#allocation2 + $0x38] sm:$0xff]  ;;  %v4695_v12 = vld [vmem:[#allocation2 + $0x40] sm:$0xff]  ;;  %v4697_v13 = vld [vmem:[#allocation2 + $0x48] sm:$0xff] }
  0x29   :  { %4375 = vmatpush3.bf16.msra.mxu0 %v4372_v3  ;;  %v4702_v14 = vld [vmem:[%s5415_s2 + $0x8] sm:$0xff]  ;;  %4377 = vmatprep.subr.bf16.mxu1 %v4376_v6  ;;  %v4384_v15 = vpack.c.bf16 %v4693_v11, %v4689_v9  ;;  %v4706_v16 = vld [vmem:[#allocation2 + $0x50] sm:$0xff]  ;;  %v4708_v17 = vld [vmem:[#allocation2 + $0x58] sm:$0xff]  ;;  %v4388_v18 = vpack.c.bf16 %v4697_v13, %v4695_v12 }
  0x2a   :  { %4381 = vmatprep.subr.bf16.mxu0 %v4380_v10  ;;  %4379 = vmatpush3.bf16.msra.mxu1 %v4376_v6  ;;  %v4712_v19 = vld [vmem:[#allocation2 + $0x60] sm:$0xff]  ;;  %v4714_v20 = vld [vmem:[#allocation2 + $0x68] sm:$0xff]  ;;  %v4392_v21 = vpack.c.bf16 %v4708_v17, %v4706_v16  ;;  %v4722_v22 = vld [vmem:[#allocation2 + $0x70] sm:$0xff] }
  0x2b   :  { %4385 = vmatprep.subr.bf16.mxu1 %v4384_v15  ;;  %v4724_v23 = vld [vmem:[#allocation2 + $0x78] sm:$0xff]  ;;  %v4396_v24 = vpack.c.bf16 %v4714_v20, %v4712_v19  ;;  %v154_v25 = vld [vmem:[%s5416_s3] sm:$0xff]  ;;  %v155_v26 = vld [vmem:[%s5416_s3 + $0x8] sm:$0xff] }
  0x2c   :  { %4041 = vmatmul.mubr.msk.f32.vlgmr.msra.gmra.mrb[0].mxu0 %vm111_vm0, %v4702_v14  ;;  %v4400_v27 = vpack.c.bf16 %v4724_v23, %v4722_v22  ;;  %v4746_v28 = vpack.c.bf16 %v155_v26, %v154_v25  ;;  %v4767_v29 = vld [vmem:[#allocation4] sm:$0xff]  ;;  %v4769_v30 = vld [vmem:[#allocation4 + $0x8] sm:$0xff]  ;;  %v4782_v38 = vld [vmem:[#allocation4 + $0x10] sm:$0xff] }
  0x2d   :  { %4383 = vmatpush3.bf16.msra.mxu0 %v4380_v10  ;;  %4054 = vmatprep.mubr.msk.f32.mxu0 %vm111_vm0, %v4671_v2  ;;  %v4773_v31 = vpack.c.bf16 %v4769_v30, %v4767_v29  ;;  %v79_v32 = vsub.f32 %v4664_v0, %v4767_v29  ;;  %v80_v33 = vsub.f32 %v4666_v1, %v4769_v30  ;;  %v4784_v39 = vld [vmem:[#allocation4 + $0x18] sm:$0xff]  ;;  %v4790_v45 = vld [vmem:[#allocation4 + $0x20] sm:$0xff]  ;;  %v4792_v46 = vld [vmem:[#allocation4 + $0x28] sm:$0xff] }
  0x2e   :  { %4048 = vmatmul.mubr.msk.f32.vlgmr.msra.gmra.mrb[0].mxu1 %vm111_vm0, %v4702_v14  ;;  %4389 = vmatprep.subr.bf16.mxu0 %v4388_v18  ;;  %v81_v40 = vsub.f32 %v4677_v4, %v4782_v38  ;;  %v82_v41 = vsub.f32 %v4679_v5, %v4784_v39  ;;  %v83_v49 = vsub.f32 %v4685_v7, %v4790_v45  ;;  %v4800_v55 = vld [vmem:[#allocation4 + $0x30] sm:$0xff]  ;;  %v4802_v56 = vld [vmem:[#allocation4 + $0x38] sm:$0xff] }
  0x2f   :  { %4387 = vmatpush3.bf16.msra.mxu1 %v4384_v15  ;;  %4061 = vmatprep.mubr.msk.f32.mxu1 %vm111_vm0, %v4671_v2  ;;  %v95_v34 = vmul.f32 %v79_v32, %v79_v32  ;;  %v96_v35 = vmul.f32 %v80_v33, %v80_v33  ;;  %v84_v50 = vsub.f32 %v4687_v8, %v4792_v46 }
  0x30   :  { %4055 = vmatmul.mubr.msk.f32.vlgmr.msra.gmra.mrb[2].mxu0 %vm111_vm0, %v4702_v14  ;;  %4393 = vmatprep.subr.bf16.mxu1 %v4392_v21  ;;  %v97_v43 = vmul.f32 %v81_v40, %v81_v40  ;;  %v98_v44 = vmul.f32 %v82_v41, %v82_v41  ;;  %v99_v52 = vmul.f32 %v83_v49, %v83_v49 }
  0x31   :  { %4391 = vmatpush3.bf16.msra.mxu0 %v4388_v18  ;;  %4068 = vmatprep.mubr.msk.f32.mxu0 %vm111_vm0, %v4671_v2  ;;  %v112_v36 = vsel %vm111_vm0, %v95_v34, 0.0  ;;  %v113_v37 = vsel %vm111_vm0, %v96_v35, 0.0  ;;  %v100_v53 = vmul.f32 %v84_v50, %v84_v50  ;;  %v85_v59 = vsub.f32 %v4689_v9, %v4800_v55 }
  0x32   :  { %4062 = vmatmul.mubr.msk.f32.vlgmr.msra.gmra.mrb[2].mxu1 %vm111_vm0, %v4702_v14  ;;  %4397 = vmatprep.subr.bf16.mxu0 %v4396_v24  ;;  %v114_v42 = vadd.f32 %v113_v37, %v112_v36  ;;  %v115_v47 = vsel %vm111_vm0, %v97_v43, 0.0  ;;  %v117_v48 = vsel %vm111_vm0, %v98_v44, 0.0  ;;  %v119_v57 = vsel %vm111_vm0, %v99_v52, 0.0 }
  0x33   :  { %4395 = vmatpush3.bf16.msra.mxu1 %v4392_v21  ;;  %4075 = vmatprep.mubr.msk.f32.mxu1 %vm111_vm0, %v4671_v2  ;;  %v121_v58 = vsel %vm111_vm0, %v100_v53, 0.0  ;;  %v86_v60 = vsub.f32 %v4693_v11, %v4802_v56  ;;  %v101_v62 = vmul.f32 %v85_v59, %v85_v59  ;;  %v2559_v21 = vmul.f32 %v4677_v4, %v4677_v4  ;;  %v4857_v59 = vld [vmem:[#allocation4 + $0x48] sm:$0xff] }
  0x34   :  { %4069 = vmatmul.mubr.msk.f32.vlgmr.msra.gmra.mrb[4].mxu0 %vm111_vm0, %v4702_v14  ;;  %4401 = vmatprep.subr.bf16.mxu1 %v4400_v27  ;;  %v116_v51 = vadd.f32 %v115_v47, %v114_v42  ;;  %v2575_v25 = vmul.f32 %v4782_v38, %v4782_v38  ;;  %v2576_v26 = vmul.f32 %v4784_v39, %v4784_v39 }
  0x35   :  { %4399 = vmatpush3.bf16.msra.mxu0 %v4396_v24  ;;  %4082 = vmatprep.mubr.msk.f32.mxu0 %vm111_vm0, %v4671_v2  ;;  %v102_v63 = vmul.f32 %v86_v60, %v86_v60  ;;  %v123_v6 = vsel %vm111_vm0, %v101_v62, 0.0  ;;  %v2560_v24 = vmul.f32 %v4679_v5, %v4679_v5  ;;  %v4867_v62 = vld [vmem:[#allocation4 + $0x58] sm:$0xff] }
  0x36   :  { %4076 = vmatmul.mubr.msk.f32.vlgmr.msra.gmra.mrb[4].mxu1 %vm111_vm0, %v4702_v14  ;;  %4405 = vmatprep.subr.bf16.mxu0 %v4746_v28  ;;  %v118_v54 = vadd.f32 %v117_v48, %v116_v51  ;;  %v4412_v48 = vpack.c.bf16 %v4784_v39, %v4782_v38 }
  0x37   :  { %4403 = vmatpush3.bf16.msra.mxu1 %v4400_v27  ;;  %4089 = vmatprep.mubr.msk.f32.mxu1 %vm111_vm0, %v4671_v2  ;;  %v125_v10 = vsel %vm111_vm0, %v102_v63, 0.0  ;;  %v2591_v27 = vadd.f32 %v2575_v25, %v2559_v21  ;;  %v2592_v32 = vadd.f32 %v2576_v26, %v2560_v24  ;;  %v4887_v21 = vld [vmem:[#allocation4 + $0x78] sm:$0xff]  ;;  %v1748_v25 = vmul.f32 %v4767_v29, %v4664_v0 }
  0x38   :  { %4083 = vmatmul.mubr.msk.f32.vlgmr.msra.gmra.mrb[6].mxu0 %vm111_vm0, %v4702_v14  ;;  %4516 = vmatprep.subr.bf16.mxu1 %v4746_v28  ;;  %v120_v61 = vadd.f32 %v119_v57, %v118_v54  ;;  %v4420_v57 = vpack.c.bf16 %v4802_v56, %v4800_v55  ;;  %v1749_v26 = vmul.f32 %v4769_v30, %v4666_v1 }
  0x39   :  { %4407 = vmatpush3.bf16.msra.mxu0 %v4746_v28  ;;  %v4822_v33 = vpack.c.bf16 %v2592_v32, %v2591_v27  ;;  %v1750_v32 = vmul.f32 %v4782_v38, %v4677_v4  ;;  %v1755_v38 = vmul.f32 %v4802_v56, %v4693_v11 }
  0x3a   :  { %4090 = vmatmul.mubr.msk.f32.vlgmr.msra.gmra.mrb[6].mxu1 %vm111_vm0, %v4702_v14  ;;  %4441 = vmatprep.subr.bf16.mxu0 %v4746_v28  ;;  %v122_v3 = vadd.f32 %v121_v58, %v120_v61  ;;  %v4855_v58 = vld [vmem:[#allocation4 + $0x40] sm:$0xff]  ;;  %v4865_v61 = vld [vmem:[#allocation4 + $0x50] sm:$0xff]  ;;  %v4444_v27 = vpack.c.bf16 %v1749_v26, %v1748_v25  ;;  %v2580_v26 = vmul.f32 %v4802_v56, %v4802_v56 }
  0x3b   :  { %4517 = vmatpush3.bf16.msra.mxu1 %v4746_v28  ;;  %v4424_v60 = vpack.c.bf16 %v4857_v59, %v4855_v58  ;;  %v4428_v63 = vpack.c.bf16 %v4867_v62, %v4865_v61  ;;  %v2581_v56 = vmul.f32 %v4855_v58, %v4855_v58 }
  0x3c   :  { %4409 = vmatprep.subr.bf16.mxu1 %v4773_v31  ;;  %v124_v15 = vadd.f32 %v123_v6, %v122_v3  ;;  %v4875_v3 = vld [vmem:[#allocation4 + $0x60] sm:$0xff]  ;;  %v4877_v6 = vld [vmem:[#allocation4 + $0x68] sm:$0xff] }
  0x3e   :  { %v4812_v18 = vadd.f32 %v125_v10, %v124_v15  ;;  %v4432_v10 = vpack.c.bf16 %v4877_v6, %v4875_v3  ;;  %v4885_v15 = vld [vmem:[#allocation4 + $0x70] sm:$0xff] }
  0x3f   :  { %v4436_v24 = vpack.c.bf16 %v4887_v21, %v4885_v15 }
  0xff   :  { %v4042_v34 = vpop.f32.mrb[0].mxu0 }
 0x100   :  { %v228_v35 = vpop.f32.mrb[1].mxu0 }
 0x101   :  { %4096 = vmatprep.mubr.msk.f32.mxu0 %vm111_vm0, %v228_v35  ;;  %v4049_v36 = vpop.f32.mrb[0].mxu1 }
 0x102   :  { %4097 = vmatmul.mubr.msk.f32.vlgmr.msra.gmra.mrb[8].mxu0 %vm111_vm0, %v4042_v34  ;;  %v303_v37 = vpop.f32.mrb[1].mxu1  ;;  %v1751_v34 = vmul.f32 %v4784_v39, %v4679_v5  ;;  %v1754_v5 = vmul.f32 %v4800_v55, %v4689_v9 }
 0x103   :  { %v4056_v40 = vpop.f32.mrb[2].mxu0  ;;  %4099 = vmatprep.mubr.msk.f32.mxu0 %vm111_vm0, %v303_v37  ;;  %4443 = vmatpush3.bf16.msra.mxu0 %v4746_v28  ;;  %v1753_v37 = vmul.f32 %v4792_v46, %v4687_v8 }
 0x104   :  { %v378_v41 = vpop.f32.mrb[3].mxu0  ;;  %4477 = vmatprep.subr.bf16.mxu0 %v4746_v28  ;;  %v4448_v35 = vpack.c.bf16 %v1751_v34, %v1750_v32  ;;  %v4456_v39 = vpack.c.bf16 %v1755_v38, %v1754_v5  ;;  %v2582_v34 = vmul.f32 %v4857_v59, %v4857_v59 }
 0x105   :  { %v4063_v42 = vpop.f32.mrb[2].mxu1 }
 0x106   :  { %4100 = vmatmul.mubr.msk.f32.gmra.mrb[10].mxu0 %vm111_vm0, %v4049_v36  ;;  %v453_v43 = vpop.f32.mrb[3].mxu1  ;;  %v1752_v36 = vmul.f32 %v4790_v45, %v4685_v7 }
 0x107   :  { %v4070_v44 = vpop.f32.mrb[4].mxu0  ;;  %4102 = vmatprep.mubr.msk.f32.mxu0 %vm111_vm0, %v378_v41  ;;  %v1757_v41 = vmul.f32 %v4857_v59, %v4697_v13 }
 0x108   :  { %v528_v47 = vpop.f32.mrb[5].mxu0  ;;  %v4452_v4 = vpack.c.bf16 %v1753_v37, %v1752_v36  ;;  %v2568_v36 = vmul.f32 %v4708_v17, %v4708_v17  ;;  %v2583_v37 = vmul.f32 %v4865_v61, %v4865_v61 }
 0x109   :  { %4108 = vmatprep.mubr.msk.f32.mxu1 %vm111_vm0, %v528_v47  ;;  %v4077_v49 = vpop.f32.mrb[4].mxu1  ;;  %v1760_v47 = vmul.f32 %v4875_v3, %v4712_v19 }
 0x10a   :  { %4103 = vmatmul.mubr.msk.f32.gmra.mrb[12].mxu0 %vm111_vm0, %v4056_v40  ;;  %4109 = vmatmul.mubr.msk.f32.vlgmr.msra.gmra.mrb[8].mxu1 %vm111_vm0, %v4070_v44  ;;  %v603_v50 = vpop.f32.mrb[5].mxu1  ;;  %v1756_v40 = vmul.f32 %v4855_v58, %v4695_v12  ;;  %v1759_v44 = vmul.f32 %v4867_v62, %v4708_v17 }
 0x10b   :  { %4105 = vmatprep.mubr.msk.f32.mxu0 %vm111_vm0, %v453_v43  ;;  %4411 = vmatpush3.bf16.msra.mxu1 %v4773_v31  ;;  %v4084_v51 = vpop.f32.mrb[6].mxu0  ;;  %v4416_v31 = vpack.c.bf16 %v4792_v46, %v4790_v45  ;;  %v1758_v43 = vmul.f32 %v4865_v61, %v4706_v16 }
 0x10c   :  { %4111 = vmatprep.mubr.msk.f32.mxu1 %vm111_vm0, %v603_v50  ;;  %v678_v52 = vpop.f32.mrb[7].mxu0  ;;  %4413 = vmatprep.subr.bf16.mxu1 %v4412_v48 }
 0x10d   :  { %v4091_v53 = vpop.f32.mrb[6].mxu1 }
 0x10e   :  { %4106 = vmatmul.mubr.msk.f32.gmra.mrb[14].mxu0 %vm111_vm0, %v4063_v42  ;;  %4112 = vmatmul.mubr.msk.f32.gmra.mrb[10].mxu1 %vm111_vm0, %v4077_v49  ;;  %v753_v54 = vpop.f32.mrb[7].mxu1  ;;  %v4460_v42 = vpack.c.bf16 %v1757_v41, %v1756_v40  ;;  %v4464_v49 = vpack.c.bf16 %v1759_v44, %v1758_v43  ;;  %v2585_v43 = vmul.f32 %v4875_v3, %v4875_v3 }
 0x10f   :  { %4114 = vmatprep.mubr.msk.f32.mxu1 %vm111_vm0, %v678_v52  ;;  %v1763_v52 = vmul.f32 %v4887_v21, %v4724_v23  ;;  %v2586_v44 = vmul.f32 %v4877_v6, %v4877_v6 }
 0x112   :  { %4115 = vmatmul.mubr.msk.f32.gmra.mrb[12].mxu1 %vm111_vm0, %v4084_v51  ;;  %v1762_v51 = vmul.f32 %v4885_v15, %v4722_v22 }
 0x113   :  { %4117 = vmatprep.mubr.msk.f32.mxu1 %vm111_vm0, %v753_v54  ;;  %v2558_v54 = vmul.f32 %v4666_v1, %v4666_v1  ;;  %v2561_v1 = vmul.f32 %v4685_v7, %v4685_v7 }
 0x116   :  { %4118 = vmatmul.mubr.msk.f32.gmra.mrb[14].mxu1 %vm111_vm0, %v4091_v53  ;;  %v2557_v53 = vmul.f32 %v4664_v0, %v4664_v0 }
 0x117   :  { %4124 = vmatprep.mubr.msk.f32.mxu1 %vm111_vm0, %v4671_v2 }
 0x11a   :  { %4125 = vmatmul.mubr.msk.f32.vlgmr.msra.gmra.mrb[16].mxu1 %vm111_vm0, %v4702_v14 }
 0x11b   :  { %4415 = vmatpush3.bf16.msra.mxu1 %v4412_v48  ;;  %4131 = vmatprep.mubr.msk.f32.mxu1 %vm111_vm0, %v4671_v2  ;;  %v1761_v48 = vmul.f32 %v4877_v6, %v4714_v20 }
 0x11c   :  { %4417 = vmatprep.subr.bf16.mxu1 %v4416_v31 }
 0x11d   :  { %v4468_v50 = vpack.c.bf16 %v1761_v48, %v1760_v47 }
 0x11e   :  { %4132 = vmatmul.mubr.msk.f32.vlgmr.msra.gmra.mrb[18].mxu1 %vm111_vm0, %v4702_v14 }
 0x11f   :  { %4419 = vmatpush3.bf16.msra.mxu1 %v4416_v31  ;;  %4138 = vmatprep.mubr.msk.f32.mxu1 %vm111_vm0, %v4671_v2  ;;  %v2573_v31 = vmul.f32 %v4767_v29, %v4767_v29  ;;  %v2562_v29 = vmul.f32 %v4687_v8, %v4687_v8  ;;  %v2563_v8 = vmul.f32 %v4689_v9, %v4689_v9 }
 0x120   :  { %4421 = vmatprep.subr.bf16.mxu1 %v4420_v57 }
 0x122   :  { %4139 = vmatmul.mubr.msk.f32.vlgmr.msra.gmra.mrb[20].mxu1 %vm111_vm0, %v4702_v14 }
 0x123   :  { %4423 = vmatpush3.bf16.msra.mxu1 %v4420_v57  ;;  %4145 = vmatprep.mubr.msk.f32.mxu1 %vm111_vm0, %v4671_v2  ;;  %v2574_v57 = vmul.f32 %v4769_v30, %v4769_v30  ;;  %v2577_v30 = vmul.f32 %v4790_v45, %v4790_v45  ;;  %v2564_v45 = vmul.f32 %v4693_v11, %v4693_v11 }
 0x124   :  { %4425 = vmatprep.subr.bf16.mxu1 %v4424_v60  ;;  %v2565_v11 = vmul.f32 %v4695_v12, %v4695_v12 }
 0x125   :  { %v2590_v0 = vadd.f32 %v2574_v57, %v2558_v54  ;;  %v2593_v25 = vadd.f32 %v2577_v30, %v2561_v1  ;;  %v2596_v32 = vadd.f32 %v2580_v26, %v2564_v45  ;;  %v2588_v54 = vmul.f32 %v4887_v21, %v4887_v21 }
 0x126   :  { %4146 = vmatmul.mubr.msk.f32.vlgmr.msra.gmra.mrb[22].mxu1 %vm111_vm0, %v4702_v14  ;;  %v2597_v38 = vadd.f32 %v2581_v56, %v2565_v11 }
 0x127   :  { %4427 = vmatpush3.bf16.msra.mxu1 %v4424_v60  ;;  %4152 = vmatprep.mubr.msk.f32.mxu1 %vm111_vm0, %v4671_v2  ;;  %v4472_v60 = vpack.c.bf16 %v1763_v52, %v1762_v51  ;;  %v2571_v51 = vmul.f32 %v4722_v22, %v4722_v22  ;;  %v2572_v52 = vmul.f32 %v4724_v23, %v4724_v23 }
 0x128   :  { %4429 = vmatprep.subr.bf16.mxu1 %v4428_v63 }
 0x12a   :  { %4153 = vmatmul.mubr.msk.f32.vlgmr.msra.gmra.mrb[24].mxu1 %vm111_vm0, %v4702_v14 }
 0x12b   :  { %4431 = vmatpush3.bf16.msra.mxu1 %v4428_v63  ;;  %4159 = vmatprep.mubr.msk.f32.mxu1 %vm111_vm0, %v4671_v2  ;;  %v2589_v63 = vadd.f32 %v2573_v31, %v2557_v53  ;;  %v2587_v53 = vmul.f32 %v4885_v15, %v4885_v15 }
 0x12c   :  { %4433 = vmatprep.subr.bf16.mxu1 %v4432_v10 }
 0x12d   :  { %v2603_v57 = vadd.f32 %v2587_v53, %v2571_v51 }
 0x12e   :  { %4160 = vmatmul.mubr.msk.f32.vlgmr.msra.gmra.mrb[26].mxu1 %vm111_vm0, %v4702_v14 }
 0x12f   :  { %4435 = vmatpush3.bf16.msra.mxu1 %v4432_v10  ;;  %4166 = vmatprep.mubr.msk.f32.mxu1 %vm111_vm0, %v4671_v2  ;;  %v2578_v10 = vmul.f32 %v4792_v46, %v4792_v46  ;;  %v2579_v46 = vmul.f32 %v4800_v55, %v4800_v55  ;;  %v2566_v55 = vmul.f32 %v4697_v13, %v4697_v13 }
 0x130   :  { %4437 = vmatprep.subr.bf16.mxu1 %v4436_v24 }
 0x131   :  { %v2594_v7 = vadd.f32 %v2578_v10, %v2562_v29 }
 0x132   :  { %4167 = vmatmul.mubr.msk.f32.vlgmr.msra.gmra.mrb[28].mxu1 %vm111_vm0, %v4702_v14 }
 0x133   :  { %4439 = vmatpush3.bf16.msra.mxu1 %v4436_v24  ;;  %4173 = vmatprep.mubr.msk.f32.mxu1 %vm111_vm0, %v4671_v2  ;;  %v4480_v24 = vpack.c.bf16 %v2590_v0, %v2589_v63  ;;  %v4488_v9 = vpack.c.bf16 %v2594_v7, %v2593_v25 }
 0x134   :  { %4445 = vmatprep.subr.bf16.mxu1 %v4444_v27 }
 0x136   :  { %4174 = vmatmul.mubr.msk.f32.vlgmr.msra.gmra.mrb[30].mxu1 %vm111_vm0, %v4702_v14 }
 0x137   :  { %4447 = vmatpush3.bf16.msra.mxu1 %v4444_v27  ;;  %4208 = vmatprep.mubr.msk.f32.mxu1 %vm111_vm0, %v4671_v2  ;;  %v2595_v27 = vadd.f32 %v2579_v46, %v2563_v8 }
 0x138   :  { %4449 = vmatprep.subr.bf16.mxu1 %v4448_v35 }
 0x139   :  { %v4492_v5 = vpack.c.bf16 %v2596_v32, %v2595_v27 }
 0x13a   :  { %4209 = vmatmul.mubr.msk.f32.vlgmr.msra.gmra.mrb[32].mxu1 %vm111_vm0, %v4702_v14 }
 0x13b   :  { %4451 = vmatpush3.bf16.msra.mxu1 %v4448_v35  ;;  %4215 = vmatprep.mubr.msk.f32.mxu1 %vm111_vm0, %v4671_v2  ;;  %v2567_v35 = vmul.f32 %v4706_v16, %v4706_v16 }
 0x13c   :  { %4453 = vmatprep.subr.bf16.mxu1 %v4452_v4 }
 0x13d   :  { %v2599_v40 = vadd.f32 %v2583_v37, %v2567_v35 }
 0x13e   :  { %4216 = vmatmul.mubr.msk.f32.vlgmr.msra.gmra.mrb[34].mxu1 %vm111_vm0, %v4702_v14 }
 0x13f   :  { %4455 = vmatpush3.bf16.msra.mxu1 %v4452_v4  ;;  %4222 = vmatprep.mubr.msk.f32.mxu1 %vm111_vm0, %v4671_v2  ;;  %v2584_v4 = vmul.f32 %v4867_v62, %v4867_v62 }
 0x140   :  { %4457 = vmatprep.subr.bf16.mxu1 %v4456_v39 }
 0x141   :  { %v2600_v41 = vadd.f32 %v2584_v4, %v2568_v36 }
 0x142   :  { %4223 = vmatmul.mubr.msk.f32.vlgmr.msra.gmra.mrb[36].mxu1 %vm111_vm0, %v4702_v14 }
 0x143   :  { %4459 = vmatpush3.bf16.msra.mxu1 %v4456_v39  ;;  %4229 = vmatprep.mubr.msk.f32.mxu1 %vm111_vm0, %v4671_v2  ;;  %v2598_v39 = vadd.f32 %v2582_v34, %v2566_v55  ;;  %v4500_v48 = vpack.c.bf16 %v2600_v41, %v2599_v40 }
 0x144   :  { %4461 = vmatprep.subr.bf16.mxu1 %v4460_v42 }
 0x145   :  { %v4496_v47 = vpack.c.bf16 %v2598_v39, %v2597_v38 }
 0x146   :  { %4230 = vmatmul.mubr.msk.f32.vlgmr.msra.gmra.mrb[38].mxu1 %vm111_vm0, %v4702_v14 }
 0x147   :  { %4463 = vmatpush3.bf16.msra.mxu1 %v4460_v42  ;;  %4236 = vmatprep.mubr.msk.f32.mxu1 %vm111_vm0, %v4671_v2  ;;  %v2569_v42 = vmul.f32 %v4712_v19, %v4712_v19 }
 0x148   :  { %4465 = vmatprep.subr.bf16.mxu1 %v4464_v49 }
 0x14a   :  { %4237 = vmatmul.mubr.msk.f32.vlgmr.msra.gmra.mrb[40].mxu1 %vm111_vm0, %v4702_v14 }
 0x14b   :  { %4467 = vmatpush3.bf16.msra.mxu1 %v4464_v49  ;;  %4243 = vmatprep.mubr.msk.f32.mxu1 %vm111_vm0, %v4671_v2  ;;  %v2601_v49 = vadd.f32 %v2585_v43, %v2569_v42 }
 0x14c   :  { %4469 = vmatprep.subr.bf16.mxu1 %v4468_v50 }
 0x14e   :  { %4244 = vmatmul.mubr.msk.f32.vlgmr.msra.gmra.mrb[42].mxu1 %vm111_vm0, %v4702_v14 }
 0x14f   :  { %4471 = vmatpush3.bf16.msra.mxu1 %v4468_v50  ;;  %4250 = vmatprep.mubr.msk.f32.mxu1 %vm111_vm0, %v4671_v2 }
 0x150   :  { %4473 = vmatprep.subr.bf16.mxu1 %v4472_v60 }
 0x152   :  { %4251 = vmatmul.mubr.msk.f32.vlgmr.msra.gmra.mrb[44].mxu1 %vm111_vm0, %v4702_v14 }
 0x153   :  { %4475 = vmatpush3.bf16.msra.mxu1 %v4472_v60  ;;  %4257 = vmatprep.mubr.msk.f32.mxu1 %vm111_vm0, %v4671_v2  ;;  %v2604_v60 = vadd.f32 %v2588_v54, %v2572_v52 }
 0x154   :  { %4481 = vmatprep.subr.bf16.mxu1 %v4480_v24 }
 0x155   :  { %v4508_v63 = vpack.c.bf16 %v2604_v60, %v2603_v57 }
 0x156   :  { %4258 = vmatmul.mubr.msk.f32.vlgmr.msra.gmra.mrb[46].mxu1 %vm111_vm0, %v4702_v14 }
 0x157   :  { %4483 = vmatpush3.bf16.msra.mxu1 %v4480_v24  ;;  %4292 = vmatprep.mubr.msk.f32.mxu1 %vm111_vm0, %v4671_v2 }
 0x158   :  { %4485 = vmatprep.subr.bf16.mxu1 %v4822_v33 }
 0x15a   :  { %4293 = vmatmul.mubr.msk.f32.vlgmr.msra.gmra.mrb[48].mxu1 %vm111_vm0, %v4702_v14 }
 0x15b   :  { %4487 = vmatpush3.bf16.msra.mxu1 %v4822_v33  ;;  %4299 = vmatprep.mubr.msk.f32.mxu1 %vm111_vm0, %v4671_v2  ;;  %v2570_v33 = vmul.f32 %v4714_v20, %v4714_v20 }
 0x15c   :  { %4489 = vmatprep.subr.bf16.mxu1 %v4488_v9 }
 0x15d   :  { %v2602_v50 = vadd.f32 %v2586_v44, %v2570_v33 }
 0x15e   :  { %4300 = vmatmul.mubr.msk.f32.vlgmr.msra.gmra.mrb[50].mxu1 %vm111_vm0, %v4702_v14 }
 0x15f   :  { %4491 = vmatpush3.bf16.msra.mxu1 %v4488_v9  ;;  %4306 = vmatprep.mubr.msk.f32.mxu1 %vm111_vm0, %v4671_v2  ;;  %v4504_v31 = vpack.c.bf16 %v2602_v50, %v2601_v49 }
 0x160   :  { %4493 = vmatprep.subr.bf16.mxu1 %v4492_v5 }
 0x162   :  { %4307 = vmatmul.mubr.msk.f32.vlgmr.msra.gmra.mrb[52].mxu1 %vm111_vm0, %v4702_v14 }
 0x163   :  { %4495 = vmatpush3.bf16.msra.mxu1 %v4492_v5  ;;  %4313 = vmatprep.mubr.msk.f32.mxu1 %vm111_vm0, %v4671_v2 }
 0x164   :  { %4497 = vmatprep.subr.bf16.mxu1 %v4496_v47 }
 0x166   :  { %4314 = vmatmul.mubr.msk.f32.vlgmr.msra.gmra.mrb[54].mxu1 %vm111_vm0, %v4702_v14 }
 0x167   :  { %4499 = vmatpush3.bf16.msra.mxu1 %v4496_v47  ;;  %4320 = vmatprep.mubr.msk.f32.mxu1 %vm111_vm0, %v4671_v2 }
 0x168   :  { %4501 = vmatprep.subr.bf16.mxu1 %v4500_v48 }
 0x16a   :  { %4321 = vmatmul.mubr.msk.f32.vlgmr.msra.gmra.mrb[56].mxu1 %vm111_vm0, %v4702_v14 }
 0x16b   :  { %4503 = vmatpush3.bf16.msra.mxu1 %v4500_v48  ;;  %4327 = vmatprep.mubr.msk.f32.mxu1 %vm111_vm0, %v4671_v2 }
 0x16c   :  { %4505 = vmatprep.subr.bf16.mxu1 %v4504_v31 }
 0x16e   :  { %4328 = vmatmul.mubr.msk.f32.vlgmr.msra.gmra.mrb[58].mxu1 %vm111_vm0, %v4702_v14 }
 0x16f   :  { %4507 = vmatpush3.bf16.msra.mxu1 %v4504_v31  ;;  %4334 = vmatprep.mubr.msk.f32.mxu1 %vm111_vm0, %v4671_v2 }
 0x170   :  { %4509 = vmatprep.subr.bf16.mxu1 %v4508_v63 }
 0x172   :  { %4335 = vmatmul.mubr.msk.f32.vlgmr.msra.gmra.mrb[60].mxu1 %vm111_vm0, %v4702_v14 }
 0x173   :  { %4511 = vmatpush3.bf16.msra.mxu1 %v4508_v63  ;;  %4341 = vmatprep.mubr.msk.f32.mxu1 %vm111_vm0, %v4671_v2 }
 0x176   :  { %4342 = vmatmul.mubr.msk.f32.vlgmr.msra.gmra.mrb[62].mxu1 %vm111_vm0, %v4702_v14 }
 0x1d5   :  { %v5059_v0 = vpop.f32.mrb[8].mxu0 }
 0x1d6   :  { %v5061_v1 = vpop.f32.mrb[9].mxu0 }
 0x1d9   :  { %v5063_v29 = vpop.f32.mrb[10].mxu0 }
 0x1da   :  { %v5065_v30 = vpop.f32.mrb[11].mxu0 }
 0x1dd   :  { %v5067_v10 = vpop.f32.mrb[12].mxu0  ;;  %v5069_v24 = vpop.f32.mrb[8].mxu1 }
 0x1de   :  { %v5071_v25 = vpop.f32.mrb[13].mxu0  ;;  %v5073_v7 = vpop.f32.mrb[9].mxu1 }
 0x1e1   :  { %v5075_v2 = vpop.f32.mrb[14].mxu0  ;;  %v5077_v8 = vpop.f32.mrb[10].mxu1 }
 0x1e2   :  { %v5079_v14 = vpop.f32.mrb[15].mxu0  ;;  %v5081_v45 = vpop.f32.mrb[11].mxu1 }
 0x1e5   :  { %v5083_v46 = vpop.f32.mrb[12].mxu1 }
 0x1e6   :  { %v5085_v26 = vpop.f32.mrb[13].mxu1 }
 0x1e9   :  { %v5087_v9 = vpop.f32.mrb[14].mxu1 }
 0x1ea   :  { %v5089_v27 = vpop.f32.mrb[15].mxu1 }
 0x1ed   :  { %v4126_v32 = vpop.f32.mrb[16].mxu1 }
 0x1ee   :  { %v1021_v11 = vpop.f32.mrb[17].mxu1 }
 0x1ef   :  { %4180 = vmatprep.mubr.msk.f32.mxu0 %vm111_vm0, %v1021_v11 }
 0x1f0   :  { %4181 = vmatmul.mubr.msk.f32.vlgmr.msra.gmra.mrb[16].mxu0 %vm111_vm0, %v4126_v32 }
 0x1f1   :  { %v4133_v55 = vpop.f32.mrb[18].mxu1  ;;  %4479 = vmatpush3.bf16.msra.mxu0 %v4746_v28 }
 0x1f2   :  { %v1096_v56 = vpop.f32.mrb[19].mxu1  ;;  %4513 = vmatprep.subr.bf16.mxu0 %v4746_v28 }
 0x1f3   :  { %4183 = vmatprep.mubr.msk.f32.mxu0 %vm111_vm0, %v1096_v56 }
 0x1f4   :  { %4184 = vmatmul.mubr.msk.f32.gmra.mrb[18].mxu0 %vm111_vm0, %v4133_v55 }
 0x1f5   :  { %v4140_v34 = vpop.f32.mrb[20].mxu1 }
 0x1f6   :  { %v1171_v35 = vpop.f32.mrb[21].mxu1 }
 0x1f7   :  { %4186 = vmatprep.mubr.msk.f32.mxu0 %vm111_vm0, %v1171_v35 }
 0x1f8   :  { %4187 = vmatmul.mubr.msk.f32.gmra.mrb[20].mxu0 %vm111_vm0, %v4140_v34 }
 0x1f9   :  { %v4147_v36 = vpop.f32.mrb[22].mxu1 }
 0x1fa   :  { %v1246_v37 = vpop.f32.mrb[23].mxu1 }
 0x1fb   :  { %4189 = vmatprep.mubr.msk.f32.mxu0 %vm111_vm0, %v1246_v37 }
 0x1fc   :  { %4190 = vmatmul.mubr.msk.f32.gmra.mrb[22].mxu0 %vm111_vm0, %v4147_v36 }
 0x1fd   :  { %v4154_v4 = vpop.f32.mrb[24].mxu1 }
 0x1fe   :  { %v1321_v5 = vpop.f32.mrb[25].mxu1 }
 0x1ff   :  { %4192 = vmatprep.mubr.msk.f32.mxu0 %vm111_vm0, %v1321_v5 }
 0x200   :  { %4193 = vmatmul.mubr.msk.f32.gmra.mrb[24].mxu0 %vm111_vm0, %v4154_v4 }
 0x201   :  { %v4161_v38 = vpop.f32.mrb[26].mxu1 }
 0x202   :  { %v1396_v39 = vpop.f32.mrb[27].mxu1 }
 0x203   :  { %4195 = vmatprep.mubr.msk.f32.mxu0 %vm111_vm0, %v1396_v39 }
 0x204   :  { %4196 = vmatmul.mubr.msk.f32.gmra.mrb[26].mxu0 %vm111_vm0, %v4161_v38 }
 0x205   :  { %v4168_v40 = vpop.f32.mrb[28].mxu1 }
 0x206   :  { %v1471_v41 = vpop.f32.mrb[29].mxu1 }
 0x207   :  { %4198 = vmatprep.mubr.msk.f32.mxu0 %vm111_vm0, %v1471_v41 }
 0x208   :  { %4199 = vmatmul.mubr.msk.f32.gmra.mrb[28].mxu0 %vm111_vm0, %v4168_v40 }
 0x209   :  { %v4175_v42 = vpop.f32.mrb[30].mxu1 }
 0x20a   :  { %v1546_v33 = vpop.f32.mrb[31].mxu1 }
 0x20b   :  { %4201 = vmatprep.mubr.msk.f32.mxu0 %vm111_vm0, %v1546_v33 }
 0x20c   :  { %4202 = vmatmul.mubr.msk.f32.gmra.mrb[30].mxu0 %vm111_vm0, %v4175_v42 }
 0x20d   :  { %v4210_v43 = vpop.f32.mrb[32].mxu1 }
 0x20e   :  { %v1830_v44 = vpop.f32.mrb[33].mxu1 }
 0x20f   :  { %4264 = vmatprep.mubr.msk.f32.mxu0 %vm111_vm0, %v1830_v44  ;;  %v87_v44 = vsub.f32 %v4695_v12, %v4855_v58  ;;  %v91_v12 = vsub.f32 %v4712_v19, %v4875_v3  ;;  %v94_v19 = vsub.f32 %v4724_v23, %v4887_v21 }
 0x210   :  { %4265 = vmatmul.mubr.msk.f32.vlgmr.msra.gmra.mrb[32].mxu0 %vm111_vm0, %v4210_v43 }
 0x211   :  { %v4217_v47 = vpop.f32.mrb[34].mxu1  ;;  %4515 = vmatpush3.bf16.msra.mxu0 %v4746_v28 }
 0x212   :  { %v1905_v48 = vpop.f32.mrb[35].mxu1 }
 0x213   :  { %4267 = vmatprep.mubr.msk.f32.mxu0 %vm111_vm0, %v1905_v48  ;;  %v103_v48 = vmul.f32 %v87_v44, %v87_v44 }
 0x214   :  { %4268 = vmatmul.mubr.msk.f32.gmra.mrb[34].mxu0 %vm111_vm0, %v4217_v47  ;;  %v88_v47 = vsub.f32 %v4697_v13, %v4857_v59 }
 0x215   :  { %v4224_v49 = vpop.f32.mrb[36].mxu1 }
 0x216   :  { %v1980_v50 = vpop.f32.mrb[37].mxu1 }
 0x217   :  { %4270 = vmatprep.mubr.msk.f32.mxu0 %vm111_vm0, %v1980_v50  ;;  %v104_v50 = vmul.f32 %v88_v47, %v88_v47 }
 0x218   :  { %4271 = vmatmul.mubr.msk.f32.gmra.mrb[36].mxu0 %vm111_vm0, %v4224_v49  ;;  %v89_v49 = vsub.f32 %v4706_v16, %v4865_v61  ;;  %v92_v16 = vsub.f32 %v4714_v20, %v4877_v6  ;;  %v107_v61 = vmul.f32 %v91_v12, %v91_v12  ;;  %v3405_v12 = vmul.f32 %v5075_v2, %v5075_v2 }
 0x219   :  { %v4231_v51 = vpop.f32.mrb[38].mxu1 }
 0x21a   :  { %v2055_v52 = vpop.f32.mrb[39].mxu1 }
 0x21b   :  { %4273 = vmatprep.mubr.msk.f32.mxu0 %vm111_vm0, %v2055_v52  ;;  %v105_v52 = vmul.f32 %v89_v49, %v89_v49  ;;  %v3403_v49 = vmul.f32 %v5067_v10, %v5067_v10 }
 0x21c   :  { %4274 = vmatmul.mubr.msk.f32.gmra.mrb[38].mxu0 %vm111_vm0, %v4231_v51  ;;  %v127_v51 = vsel %vm111_vm0, %v103_v48, 0.0 }
 0x21d   :  { %v4238_v53 = vpop.f32.mrb[40].mxu1  ;;  %v131_v58 = vsel %vm111_vm0, %v105_v52, 0.0  ;;  %v3402_v52 = vmul.f32 %v5071_v25, %v5071_v25 }
 0x21e   :  { %v2130_v54 = vpop.f32.mrb[41].mxu1 }
 0x21f   :  { %4276 = vmatprep.mubr.msk.f32.mxu0 %vm111_vm0, %v2130_v54  ;;  %v90_v54 = vsub.f32 %v4708_v17, %v4867_v62  ;;  %v93_v17 = vsub.f32 %v4722_v22, %v4885_v15  ;;  %v108_v62 = vmul.f32 %v92_v16, %v92_v16  ;;  %v3399_v15 = vmul.f32 %v5059_v0, %v5059_v0 }
 0x220   :  { %4277 = vmatmul.mubr.msk.f32.gmra.mrb[40].mxu0 %vm111_vm0, %v4238_v53  ;;  %v128_v53 = vadd.f32 %v127_v51, %v4812_v18 }
 0x221   :  { %v4245_v28 = vpop.f32.mrb[42].mxu1  ;;  %v106_v13 = vmul.f32 %v90_v54, %v90_v54 }
 0x222   :  { %v2205_v31 = vpop.f32.mrb[43].mxu1 }
 0x223   :  { %4279 = vmatprep.mubr.msk.f32.mxu0 %vm111_vm0, %v2205_v31 }
 0x224   :  { %4280 = vmatmul.mubr.msk.f32.gmra.mrb[42].mxu0 %vm111_vm0, %v4245_v28  ;;  %v129_v28 = vsel %vm111_vm0, %v104_v50, 0.0 }
 0x225   :  { %v4252_v57 = vpop.f32.mrb[44].mxu1  ;;  %v130_v31 = vadd.f32 %v129_v28, %v128_v53 }
 0x226   :  { %v2280_v60 = vpop.f32.mrb[45].mxu1 }
 0x227   :  { %4282 = vmatprep.mubr.msk.f32.mxu0 %vm111_vm0, %v2280_v60  ;;  %v132_v59 = vadd.f32 %v131_v58, %v130_v31  ;;  %v135_v60 = vsel %vm111_vm0, %v107_v61, 0.0 }
 0x228   :  { %4283 = vmatmul.mubr.msk.f32.gmra.mrb[44].mxu0 %vm111_vm0, %v4252_v57  ;;  %v133_v57 = vsel %vm111_vm0, %v106_v13, 0.0 }
 0x229   :  { %v4259_v63 = vpop.f32.mrb[46].mxu1  ;;  %v134_v18 = vadd.f32 %v133_v57, %v132_v59  ;;  %v3404_v59 = vmul.f32 %v5079_v14, %v5079_v14 }
 0x22a   :  { %v2355_v32 = vpop.f32.mrb[47].mxu1 }
 0x22b   :  { %4285 = vmatprep.mubr.msk.f32.mxu0 %vm111_vm0, %v2355_v32  ;;  %v136_v3 = vadd.f32 %v135_v60, %v134_v18  ;;  %v137_v32 = vsel %vm111_vm0, %v108_v62, 0.0 }
 0x22c   :  { %4286 = vmatmul.mubr.msk.f32.gmra.mrb[46].mxu0 %vm111_vm0, %v4259_v63  ;;  %v109_v63 = vmul.f32 %v93_v17, %v93_v17  ;;  %v3407_v17 = vmul.f32 %v5069_v24, %v5069_v24 }
 0x22d   :  { %v4294_v11 = vpop.f32.mrb[48].mxu1 }
 0x22e   :  { %v2671_v55 = vpop.f32.mrb[49].mxu1  ;;  %v139_v20 = vsel %vm111_vm0, %v109_v63, 0.0 }
 0x22f   :  { %4348 = vmatprep.mubr.msk.f32.mxu0 %vm111_vm0, %v2671_v55  ;;  %v138_v55 = vadd.f32 %v137_v32, %v136_v3 }
 0x230   :  { %4349 = vmatmul.mubr.msk.f32.vlgmr.msra.gmra.mrb[48].mxu0 %vm111_vm0, %v4294_v11  ;;  %v110_v11 = vmul.f32 %v94_v19, %v94_v19  ;;  %v3406_v19 = vmul.f32 %v5073_v7, %v5073_v7 }
 0x231   :  { %v4301_v56 = vpop.f32.mrb[50].mxu1  ;;  %v140_v6 = vadd.f32 %v139_v20, %v138_v55  ;;  %v3409_v55 = vmul.f32 %v5077_v8, %v5077_v8 }
 0x232   :  { %v2746_v34 = vpop.f32.mrb[51].mxu1 }
 0x233   :  { %4351 = vmatprep.mubr.msk.f32.mxu0 %vm111_vm0, %v2746_v34 }
 0x234   :  { %4352 = vmatmul.mubr.msk.f32.gmra.mrb[50].mxu0 %vm111_vm0, %v4301_v56  ;;  %v141_v56 = vsel %vm111_vm0, %v110_v11, 0.0 }
 0x235   :  { %v4308_v35 = vpop.f32.mrb[52].mxu1  ;;  %v142_v34 = vadd.f32 %v141_v56, %v140_v6  ;;  %v3408_v56 = vmul.f32 %v5081_v45, %v5081_v45 }
 0x236   :  { %v2821_v36 = vpop.f32.mrb[53].mxu1 }
 0x237   :  { %4354 = vmatprep.mubr.msk.f32.mxu0 %vm111_vm0, %v2821_v36  ;;  %143 = vadd.xlane.f32.xlu0 %v142_v34  ;;  %v3398_v36 = vmul.f32 %v5061_v1, %v5061_v1 }
 0x238   :  { %4355 = vmatmul.mubr.msk.f32.gmra.mrb[52].mxu0 %vm111_vm0, %v4308_v35 }
 0x239   :  { %v4315_v37 = vpop.f32.mrb[54].mxu1 }
 0x23a   :  { %v2896_v4 = vpop.f32.mrb[55].mxu1 }
 0x23b   :  { %4357 = vmatprep.mubr.msk.f32.mxu0 %vm111_vm0, %v2896_v4 }
 0x23c   :  { %4358 = vmatmul.mubr.msk.f32.gmra.mrb[54].mxu0 %vm111_vm0, %v4315_v37 }
 0x23d   :  { %v4322_v5 = vpop.f32.mrb[56].mxu1 }
 0x23e   :  { %v2971_v38 = vpop.f32.mrb[57].mxu1 }
 0x23f   :  { %4360 = vmatprep.mubr.msk.f32.mxu0 %vm111_vm0, %v2971_v38 }
 0x240   :  { %4361 = vmatmul.mubr.msk.f32.gmra.mrb[56].mxu0 %vm111_vm0, %v4322_v5 }
 0x241   :  { %v4329_v39 = vpop.f32.mrb[58].mxu1 }
 0x242   :  { %v3046_v40 = vpop.f32.mrb[59].mxu1 }
 0x243   :  { %4363 = vmatprep.mubr.msk.f32.mxu0 %vm111_vm0, %v3046_v40  ;;  %v3401_v40 = vmul.f32 %v5063_v29, %v5063_v29 }
 0x244   :  { %4364 = vmatmul.mubr.msk.f32.gmra.mrb[58].mxu0 %vm111_vm0, %v4329_v39 }
 0x245   :  { %v4336_v41 = vpop.f32.mrb[60].mxu1 }
 0x246   :  { %v3121_v42 = vpop.f32.mrb[61].mxu1 }
 0x247   :  { %4366 = vmatprep.mubr.msk.f32.mxu0 %vm111_vm0, %v3121_v42 }
 0x248   :  { %4367 = vmatmul.mubr.msk.f32.gmra.mrb[60].mxu0 %vm111_vm0, %v4336_v41 }
 0x249   :  { %v4343_v33 = vpop.f32.mrb[62].mxu1 }
 0x24a   :  { %v3196_v43 = vpop.f32.mrb[63].mxu1 }
 0x24b   :  { %4369 = vmatprep.mubr.msk.f32.mxu0 %vm111_vm0, %v3196_v43 }
 0x24c   :  { %4370 = vmatmul.mubr.msk.f32.gmra.mrb[62].mxu0 %vm111_vm0, %v4343_v33  ;;  %v3400_v33 = vmul.f32 %v5065_v30, %v5065_v30 }
 0x2c3   :  { %v4182_v22 = vpop.f32.mrb[16].mxu0 }
 0x2c4   :  { %v3415_v35 = vmul.f32 %v4182_v22, %v4182_v22  ;;  %v5170_v23 = vmul.f32 %v4182_v22, %v5059_v0  ;;  %v1669_v21 = vpop.f32.mrb[17].mxu0 }
 0x2c5   :  { %v3414_v37 = vmul.f32 %v1669_v21, %v1669_v21  ;;  %v5175_v4 = vmul.f32 %v1669_v21, %v5061_v1  ;;  %v3411_v21 = vmul.f32 %v5083_v46, %v5083_v46 }
 0x2c6   :  { %v5177_v5 = vadd.f32 %v3415_v35, %v3399_v15 }
 0x2c7   :  { %v4185_v38 = vpop.f32.mrb[18].mxu0  ;;  %v5179_v39 = vadd.f32 %v3414_v37, %v3398_v36 }
 0x2c8   :  { %v3417_v41 = vmul.f32 %v4185_v38, %v4185_v38  ;;  %v5184_v0 = vmul.f32 %v4185_v38, %v5063_v29  ;;  %v1679_v42 = vpop.f32.mrb[19].mxu0  ;;  %v3410_v38 = vmul.f32 %v5085_v26, %v5085_v26 }
 0x2c9   :  { %v3416_v43 = vmul.f32 %v1679_v42, %v1679_v42  ;;  %v5189_v1 = vmul.f32 %v1679_v42, %v5065_v30 }
 0x2ca   :  { %v5191_v44 = vadd.f32 %v3417_v41, %v3401_v40 }
 0x2cb   :  { %v4188_v47 = vpop.f32.mrb[20].mxu0  ;;  %v5193_v48 = vadd.f32 %v3416_v43, %v3400_v33  ;;  %v3413_v43 = vmul.f32 %v5087_v9, %v5087_v9 }
 0x2cc   :  { %v3419_v50 = vmul.f32 %v4188_v47, %v4188_v47  ;;  %v5198_v29 = vmul.f32 %v4188_v47, %v5067_v10  ;;  %v1689_v51 = vpop.f32.mrb[21].mxu0 }
 0x2cd   :  { %v3418_v53 = vmul.f32 %v1689_v51, %v1689_v51  ;;  %v5203_v30 = vmul.f32 %v1689_v51, %v5071_v25 }
 0x2ce   :  { %v5205_v54 = vadd.f32 %v3419_v50, %v3403_v49  ;;  %v3412_v50 = vmul.f32 %v5089_v27, %v5089_v27 }
 0x2cf   :  { %v4191_v28 = vpop.f32.mrb[22].mxu0  ;;  %v5207_v31 = vadd.f32 %v3418_v53, %v3402_v52 }
 0x2d0   :  { %v3421_v13 = vmul.f32 %v4191_v28, %v4191_v28  ;;  %v5212_v10 = vmul.f32 %v4191_v28, %v5075_v2  ;;  %v1699_v58 = vpop.f32.mrb[23].mxu0 }
 0x2d1   :  { %v3420_v16 = vmul.f32 %v1699_v58, %v1699_v58  ;;  %v5217_v25 = vmul.f32 %v1699_v58, %v5079_v14 }
 0x2d2   :  { %v5219_v61 = vadd.f32 %v3421_v13, %v3405_v12  ;;  %v3479_v12 = vmul.f32 2.0, %v5170_v23 }
 0x2d3   :  { %v4194_v57 = vpop.f32.mrb[24].mxu0  ;;  %v5221_v18 = vadd.f32 %v3420_v16, %v3404_v59 }
 0x2d4   :  { %v3423_v62 = vmul.f32 %v4194_v57, %v4194_v57  ;;  %v5226_v2 = vmul.f32 %v4194_v57, %v5069_v24  ;;  %v1709_v60 = vpop.f32.mrb[25].mxu0 }
 0x2d5   :  { %v3422_v3 = vmul.f32 %v1709_v60, %v1709_v60  ;;  %v5231_v14 = vmul.f32 %v1709_v60, %v5073_v7 }
 0x2d6   :  { %v5233_v63 = vadd.f32 %v3423_v62, %v3407_v17  ;;  %v3495_v62 = vadd.f32 0.0001, %v3479_v12 }
 0x2d7   :  { %v4197_v32 = vpop.f32.mrb[26].mxu0  ;;  %v5235_v11 = vadd.f32 %v3422_v3, %v3406_v19 }
 0x2d8   :  { %v3425_v20 = vmul.f32 %v4197_v32, %v4197_v32  ;;  %v5240_v24 = vmul.f32 %v4197_v32, %v5077_v8  ;;  %v1719_v6 = vpop.f32.mrb[27].mxu0 }
 0x2d9   :  { %v3424_v34 = vmul.f32 %v1719_v6, %v1719_v6  ;;  %v5245_v7 = vmul.f32 %v1719_v6, %v5081_v45 }
 0x2da   :  { %v5247_v22 = vadd.f32 %v3425_v20, %v3409_v55  ;;  %v3480_v55 = vmul.f32 2.0, %v5189_v1 }
 0x2db   :  { %v4200_v15 = vpop.f32.mrb[28].mxu0  ;;  %v5249_v35 = vadd.f32 %v3424_v34, %v3408_v56 }
 0x2dc   :  { %v3427_v36 = vmul.f32 %v4200_v15, %v4200_v15  ;;  %v5254_v8 = vmul.f32 %v4200_v15, %v5083_v46  ;;  %v1729_v37 = vpop.f32.mrb[29].mxu0 }
 0x2dd   :  { %v3426_v40 = vmul.f32 %v1729_v37, %v1729_v37  ;;  %v5259_v45 = vmul.f32 %v1729_v37, %v5085_v26 }
 0x2de   :  { %v5261_v41 = vadd.f32 %v3427_v36, %v3411_v21  ;;  %v3483_v36 = vmul.f32 2.0, %v5198_v29 }
 0x2df   :  { %v4203_v42 = vpop.f32.mrb[30].mxu0  ;;  %v5263_v33 = vadd.f32 %v3426_v40, %v3410_v38  ;;  %v3496_v40 = vadd.f32 0.0001, %v3480_v55 }
 0x2e0   :  { %v3429_v47 = vmul.f32 %v4203_v42, %v4203_v42  ;;  %v5268_v46 = vmul.f32 %v4203_v42, %v5087_v9  ;;  %v1739_v49 = vpop.f32.mrb[31].mxu0  ;;  %v3478_v9 = vmul.f32 2.0, %v5175_v4  ;;  %v3482_v42 = vmul.f32 2.0, %v5203_v30 }
 0x2e1   :  { %v3428_v51 = vmul.f32 %v1739_v49, %v1739_v49  ;;  %v5273_v26 = vmul.f32 %v1739_v49, %v5089_v27  ;;  %v3481_v27 = vmul.f32 2.0, %v5184_v0  ;;  %v3499_v12 = vadd.f32 0.0001, %v3483_v36 }
 0x2e2   :  { %v5275_v52 = vadd.f32 %v3429_v47, %v3413_v43  ;;  %v3494_v32 = vadd.f32 0.0001, %v3478_v9 }
 0x2e3   :  { %v4266_v53 = vpop.f32.mrb[32].mxu0  ;;  %v5277_v28 = vadd.f32 %v3428_v51, %v3412_v50  ;;  %v3497_v21 = vadd.f32 0.0001, %v3481_v27 }
 0x2e4   :  { %v3463_v13 = vsub.f32 %v4266_v53, %v5170_v23  ;;  %v2478_v58 = vpop.f32.mrb[33].mxu0 }
 0x2e5   :  { %v3462_v59 = vsub.f32 %v2478_v58, %v5175_v4 }
 0x2e6   :  { %v3511_v16 = vmul.f32 2.0, %v3463_v13  ;;  %v3485_v13 = vmul.f32 2.0, %v5212_v10 }
 0x2e7   :  { %v3510_v57 = vmul.f32 2.0, %v3462_v59  ;;  %v4269_v17 = vpop.f32.mrb[34].mxu0  ;;  %v3498_v59 = vadd.f32 0.0001, %v3482_v42 }
 0x2e8   :  { %v3527_v60 = vadd.f32 0.0009, %v3511_v16  ;;  %v3465_v19 = vsub.f32 %v4269_v17, %v5184_v0  ;;  %v2488_v3 = vpop.f32.mrb[35].mxu0  ;;  %v3484_v16 = vmul.f32 2.0, %v5217_v25 }
 0x2e9   :  { %v3526_v20 = vadd.f32 0.0009, %v3510_v57  ;;  %v3464_v23 = vsub.f32 %v2488_v3, %v5189_v1  ;;  %v3501_v3 = vadd.f32 0.0001, %v3485_v13 }
 0x2ea   :  { %v5287_v6 = vmul.f32 %v3527_v60, %v3495_v62  ;;  %v3513_v56 = vmul.f32 2.0, %v3465_v19 }
 0x2eb   :  { %v5289_v4 = vmul.f32 %v3526_v20, %v3494_v32  ;;  %v3512_v34 = vmul.f32 2.0, %v3464_v23  ;;  %v4272_v15 = vpop.f32.mrb[36].mxu0  ;;  %v3487_v32 = vmul.f32 2.0, %v5226_v2  ;;  %v3500_v23 = vadd.f32 0.0001, %v3484_v16 }
 0x2ec   :  { %v3529_v37 = vadd.f32 0.0009, %v3513_v56  ;;  %v3467_v0 = vsub.f32 %v4272_v15, %v5198_v29  ;;  %v2498_v38 = vpop.f32.mrb[37].mxu0  ;;  %v3486_v56 = vmul.f32 2.0, %v5231_v14 }
 0x2ed   :  { %v3528_v43 = vadd.f32 0.0009, %v3512_v34  ;;  %v3466_v1 = vsub.f32 %v2498_v38, %v5203_v30  ;;  %v3503_v38 = vadd.f32 0.0001, %v3487_v32 }
 0x2ee   :  { %v5295_v47 = vmul.f32 %v3529_v37, %v3497_v21  ;;  %v3515_v49 = vmul.f32 2.0, %v3467_v0 }
 0x2ef   :  { %v5297_v50 = vmul.f32 %v3528_v43, %v3496_v40  ;;  %v3514_v51 = vmul.f32 2.0, %v3466_v1  ;;  %v4275_v53 = vpop.f32.mrb[38].mxu0  ;;  %v3489_v40 = vmul.f32 2.0, %v5240_v24  ;;  %v3502_v1 = vadd.f32 0.0001, %v3486_v56 }
 0x2f0   :  { %v3531_v58 = vadd.f32 0.0009, %v3515_v49  ;;  %v3469_v29 = vsub.f32 %v4275_v53, %v5212_v10  ;;  %v2508_v9 = vpop.f32.mrb[39].mxu0  ;;  %v3488_v49 = vmul.f32 2.0, %v5245_v7 }
 0x2f1   :  { %v3530_v57 = vadd.f32 0.0009, %v3514_v51  ;;  %v3468_v30 = vsub.f32 %v2508_v9, %v5217_v25  ;;  %v3505_v9 = vadd.f32 0.0001, %v3489_v40 }
 0x2f2   :  { %v5303_v17 = vmul.f32 %v3531_v58, %v3499_v12  ;;  %v3517_v62 = vmul.f32 2.0, %v3469_v29 }
 0x2f3   :  { %v5305_v27 = vmul.f32 %v3530_v57, %v3498_v59  ;;  %v3516_v60 = vmul.f32 2.0, %v3468_v30  ;;  %v4278_v19 = vpop.f32.mrb[40].mxu0  ;;  %v3491_v59 = vmul.f32 2.0, %v5254_v8  ;;  %v3504_v30 = vadd.f32 0.0001, %v3488_v49 }
 0x2f4   :  { %v3533_v55 = vadd.f32 0.0009, %v3517_v62  ;;  %v3471_v10 = vsub.f32 %v4278_v19, %v5226_v2  ;;  %v2518_v20 = vpop.f32.mrb[41].mxu0  ;;  %v3490_v62 = vmul.f32 2.0, %v5259_v45 }
 0x2f5   :  { %v3532_v34 = vadd.f32 0.0009, %v3516_v60  ;;  %v3470_v25 = vsub.f32 %v2518_v20, %v5231_v14  ;;  %v3507_v20 = vadd.f32 0.0001, %v3491_v59  ;;  %v3558_v59 = vadd.f32 0.0001, %v5179_v39 }
 0x2f6   :  { %v5311_v15 = vmul.f32 %v3533_v55, %v3501_v3  ;;  %v3519_v21 = vmul.f32 2.0, %v3471_v10 }
 0x2f7   :  { %v5313_v36 = vmul.f32 %v3532_v34, %v3500_v23  ;;  %v3518_v37 = vmul.f32 2.0, %v3470_v25  ;;  %v4281_v0 = vpop.f32.mrb[42].mxu0  ;;  %v3493_v23 = vmul.f32 2.0, %v5268_v46  ;;  %v3506_v25 = vadd.f32 0.0001, %v3490_v62 }
 0x2f8   :  { %v3535_v42 = vadd.f32 0.0009, %v3519_v21  ;;  %v3473_v2 = vsub.f32 %v4281_v0, %v5240_v24  ;;  %v2528_v43 = vpop.f32.mrb[43].mxu0  ;;  %v3492_v21 = vmul.f32 2.0, %v5273_v26 }
 0x2f9   :  { %v3534_v51 = vadd.f32 0.0009, %v3518_v37  ;;  %v3472_v14 = vsub.f32 %v2528_v43, %v5245_v7  ;;  %v3509_v43 = vadd.f32 0.0001, %v3493_v23 }
 0x2fa   :  { %v5319_v53 = vmul.f32 %v3535_v42, %v3503_v38  ;;  %v3521_v12 = vmul.f32 2.0, %v3473_v2 }
 0x2fb   :  { %v5321_v13 = vmul.f32 %v3534_v51, %v3502_v1  ;;  %v3520_v58 = vmul.f32 2.0, %v3472_v14  ;;  %v4284_v29 = vpop.f32.mrb[44].mxu0 }
 0x2fc   :  { %v3537_v16 = vadd.f32 0.0009, %v3521_v12  ;;  %v3475_v24 = vsub.f32 %v4284_v29, %v5254_v8  ;;  %v2538_v57 = vpop.f32.mrb[45].mxu0 }
 0x2fd   :  { %v3536_v60 = vadd.f32 0.0009, %v3520_v58  ;;  %v3474_v7 = vsub.f32 %v2538_v57, %v5259_v45 }
 0x2fe   :  { %v5327_v19 = vmul.f32 %v3537_v16, %v3505_v9  ;;  %v3523_v3 = vmul.f32 2.0, %v3475_v24 }
 0x2ff   :  { %v5329_v32 = vmul.f32 %v3536_v60, %v3504_v30  ;;  %v3522_v55 = vmul.f32 2.0, %v3474_v7  ;;  %v4287_v10 = vpop.f32.mrb[46].mxu0 }
 0x300   :  { %v3539_v56 = vadd.f32 0.0009, %v3523_v3  ;;  %v3477_v8 = vsub.f32 %v4287_v10, %v5268_v46  ;;  %v2548_v34 = vpop.f32.mrb[47].mxu0  ;;  %v3508_v46 = vadd.f32 0.0001, %v3492_v21 }
 0x301   :  { %v3538_v37 = vadd.f32 0.0009, %v3522_v55  ;;  %v3476_v45 = vsub.f32 %v2548_v34, %v5273_v26  ;;  %v3559_v26 = vadd.f32 0.0001, %v5177_v5  ;;  %v3561_v3 = vadd.f32 0.0001, %v5191_v44 }
 0x302   :  { %v5335_v0 = vmul.f32 %v3539_v56, %v3507_v20  ;;  %v3525_v38 = vmul.f32 2.0, %v3477_v8 }
 0x303   :  { %v5337_v40 = vmul.f32 %v3538_v37, %v3506_v25  ;;  %v3524_v42 = vmul.f32 2.0, %v3476_v45  ;;  %v4350_v2 = vpop.f32.mrb[48].mxu0  ;;  %v3563_v25 = vadd.f32 0.0001, %v5205_v54 }
 0x304   :  { %v3541_v1 = vadd.f32 0.0009, %v3525_v38  ;;  %v3575_v49 = vsub.f32 %v4350_v2, %v5177_v5  ;;  %v3319_v51 = vpop.f32.mrb[49].mxu0  ;;  %v3560_v5 = vadd.f32 0.0001, %v5193_v48 }
 0x305   :  { %v3540_v14 = vadd.f32 0.0009, %v3524_v42  ;;  %v3574_v12 = vsub.f32 %v3319_v51, %v5179_v39 }
 0x306   :  { %v5341_v58 = vmul.f32 %v3541_v1, %v3509_v43  ;;  %v3591_v29 = vadd.f32 0.0009, %v3575_v49  ;;  %v3565_v1 = vadd.f32 0.0001, %v5219_v61 }
 0x307   :  { %v5344_v9 = vmul.f32 %v3540_v14, %v3508_v46  ;;  %v3590_v16 = vadd.f32 0.0009, %v3574_v12  ;;  %v4353_v24 = vpop.f32.mrb[50].mxu0 }
 0x308   :  { %v3607_v57 = vmul.f32 %v3591_v29, %v3559_v26  ;;  %v3577_v30 = vsub.f32 %v4353_v24, %v5191_v44  ;;  %v3329_v62 = vpop.f32.mrb[51].mxu0  ;;  %v3562_v44 = vadd.f32 0.0001, %v5207_v31 }
 0x309   :  { %v3606_v60 = vmul.f32 %v3590_v16, %v3558_v59  ;;  %v3576_v7 = vsub.f32 %v3329_v62, %v5193_v48  ;;  %v3566_v62 = vadd.f32 0.0001, %v5235_v11 }
 0x30a   :  { %4526 = vrcp.f32 %v3607_v57  ;;  %v3593_v55 = vadd.f32 0.0009, %v3577_v30 }
 0x30b   :  { %4528 = vrcp.f32 %v3606_v60  ;;  %v3592_v10 = vadd.f32 0.0009, %v3576_v7  ;;  %v4356_v20 = vpop.f32.mrb[52].mxu0 }
 0x30c   :  { %v3609_v23 = vmul.f32 %v3593_v55, %v3561_v3  ;;  %v3579_v39 = vsub.f32 %v4356_v20, %v5205_v54  ;;  %v3339_v56 = vpop.f32.mrb[53].mxu0  ;;  %v3564_v54 = vadd.f32 0.0001, %v5221_v18 }
 0x30d   :  { %v3608_v8 = vmul.f32 %v3592_v10, %v3560_v5  ;;  %v3578_v34 = vsub.f32 %v3339_v56, %v5207_v31 }
 0x30e   :  { %4530 = vrcp.f32 %v3609_v23  ;;  %v3595_v21 = vadd.f32 0.0009, %v3579_v39 }
 0x30f   :  { %4532 = vrcp.f32 %v3608_v8  ;;  %v3594_v37 = vadd.f32 0.0009, %v3578_v34  ;;  %v4359_v45 = vpop.f32.mrb[54].mxu0  ;;  %v3568_v34 = vadd.f32 0.0001, %v5249_v35 }
 0x310   :  { %v3611_v38 = vmul.f32 %v3595_v21, %v3563_v25  ;;  %v3581_v48 = vsub.f32 %v4359_v45, %v5219_v61  ;;  %v3349_v42 = vpop.f32.mrb[55].mxu0  ;;  %v3567_v61 = vadd.f32 0.0001, %v5233_v63 }
 0x311   :  { %v3610_v2 = vmul.f32 %v3594_v37, %v3562_v44  ;;  %v3580_v43 = vsub.f32 %v3349_v42, %v5221_v18 }
 0x312   :  { %4534 = vrcp.f32 %v3611_v38  ;;  %v3597_v49 = vadd.f32 0.0009, %v3581_v48 }
 0x313   :  { %4536 = vrcp.f32 %v3610_v2  ;;  %v3596_v51 = vadd.f32 0.0009, %v3580_v43  ;;  %v4362_v46 = vpop.f32.mrb[56].mxu0 }
 0x314   :  { %v4527_v14 = vpop.eup %4526  ;;  %v3613_v31 = vmul.f32 %v3597_v49, %v3565_v1  ;;  %v3583_v12 = vsub.f32 %v4362_v46, %v5233_v63  ;;  %v3359_v26 = vpop.f32.mrb[57].mxu0 }
 0x315   :  { %v4529_v29 = vpop.eup %4528  ;;  %v3639_v59 = vmul.f32 %v4527_v14, %v5287_v6  ;;  %v3612_v16 = vmul.f32 %v3596_v51, %v3564_v54  ;;  %v3582_v24 = vsub.f32 %v3359_v26, %v5235_v11  ;;  %v3569_v11 = vadd.f32 0.0001, %v5247_v22 }
 0x316   :  { %v3638_v57 = vmul.f32 %v4529_v29, %v5289_v4  ;;  %4538 = vrcp.f32 %v3613_v31  ;;  %v3599_v30 = vadd.f32 0.0009, %v3583_v12  ;;  %v3570_v51 = vadd.f32 0.0001, %v5263_v33 }
 0x317   :  { %v3655_v18 = vsel %vm111_vm0, %v3639_v59, 0.0  ;;  %4540 = vrcp.f32 %v3612_v16  ;;  %v3598_v60 = vadd.f32 0.0009, %v3582_v24  ;;  %v4365_v7 = vpop.f32.mrb[58].mxu0 }
 0x318   :  { %v4531_v3 = vpop.eup %4530  ;;  %v3654_v55 = vsel %vm111_vm0, %v3638_v57, 0.0  ;;  %v3615_v6 = vmul.f32 %v3599_v30, %v3567_v61  ;;  %v3585_v5 = vsub.f32 %v4365_v7, %v5247_v22  ;;  %v3369_v10 = vpop.f32.mrb[59].mxu0 }
 0x319   :  { %v4533_v20 = vpop.eup %4532  ;;  %v3656_v4 = vadd.f32 %v3655_v18, %v3654_v55  ;;  %v3641_v23 = vmul.f32 %v4531_v3, %v5295_v47  ;;  %v3614_v63 = vmul.f32 %v3598_v60, %v3566_v62  ;;  %v3584_v39 = vsub.f32 %v3369_v10, %v5249_v35 }
 0x31a   :  { %v3640_v56 = vmul.f32 %v4533_v20, %v5297_v50  ;;  %4542 = vrcp.f32 %v3615_v6  ;;  %v3601_v8 = vadd.f32 0.0009, %v3585_v5  ;;  %v3571_v47 = vadd.f32 0.0001, %v5261_v41 }
 0x31b   :  { %4544 = vrcp.f32 %v3614_v63  ;;  %v3600_v25 = vadd.f32 0.0009, %v3584_v39  ;;  %v4368_v21 = vpop.f32.mrb[60].mxu0  ;;  %v3659_v35 = vsel %vm111_vm0, %v3641_v23, 0.0  ;;  %v3572_v62 = vadd.f32 0.0001, %v5277_v28 }
 0x31c   :  { %v4535_v44 = vpop.eup %4534  ;;  %v3657_v37 = vsel %vm111_vm0, %v3640_v56, 0.0  ;;  %v3617_v45 = vmul.f32 %v3601_v8, %v3569_v11  ;;  %v3587_v38 = vsub.f32 %v4368_v21, %v5261_v41  ;;  %v3379_v48 = vpop.f32.mrb[61].mxu0 }
 0x31d   :  { %v4537_v42 = vpop.eup %4536  ;;  %v3658_v50 = vadd.f32 %v3657_v37, %v3656_v4  ;;  %v3643_v2 = vmul.f32 %v4535_v44, %v5303_v17  ;;  %v3616_v22 = vmul.f32 %v3600_v25, %v3568_v34  ;;  %v3586_v43 = vsub.f32 %v3379_v48, %v5263_v33 }
 0x31e   :  { %v3642_v1 = vmul.f32 %v4537_v42, %v5305_v27  ;;  %4546 = vrcp.f32 %v3617_v45  ;;  %v3603_v49 = vadd.f32 0.0009, %v3587_v38  ;;  %v3573_v17 = vadd.f32 0.0001, %v5275_v52 }
 0x31f   :  { %v3660_v54 = vadd.f32 %v3659_v35, %v3658_v50  ;;  %4548 = vrcp.f32 %v3616_v22  ;;  %v3602_v46 = vadd.f32 0.0009, %v3586_v43  ;;  %v4371_v41 = vpop.f32.mrb[62].mxu0  ;;  %v3663_v33 = vsel %vm111_vm0, %v3643_v2, 0.0  ;;  %v144_v35 = vpop.xlane.xlu0 %143 }
 0x320   :  { %v4539_v14 = vpop.eup %4538  ;;  %v3661_v31 = vsel %vm111_vm0, %v3642_v1, 0.0  ;;  %v3619_v12 = vmul.f32 %v3603_v49, %v3571_v47  ;;  %v3589_v26 = vsub.f32 %v4371_v41, %v5275_v52  ;;  %v3389_v29 = vpop.f32.mrb[63].mxu0  ;;  %v145_v1 = vrot.slane %v144_v35, 4 }
 0x321   :  { %v4541_v59 = vpop.eup %4540  ;;  %v3662_v16 = vadd.f32 %v3661_v31, %v3660_v54  ;;  %v3645_v27 = vmul.f32 %v4539_v14, %v5311_v15  ;;  %v3618_v24 = vmul.f32 %v3602_v46, %v3570_v51  ;;  %v3588_v57 = vsub.f32 %v3389_v29, %v5277_v28 }
 0x322   :  { %v3644_v61 = vmul.f32 %v4541_v59, %v5313_v36  ;;  %4550 = vrcp.f32 %v3619_v12  ;;  %v3605_v30 = vadd.f32 0.0009, %v3589_v26  ;;  %v146_v49 = vadd.f32 %v145_v1, %v144_v35 }
 0x323   :  { %v3664_v18 = vadd.f32 %v3663_v33, %v3662_v16  ;;  %4552 = vrcp.f32 %v3618_v24  ;;  %v3604_v60 = vadd.f32 0.0009, %v3588_v57  ;;  %v3667_v10 = vsel %vm111_vm0, %v3645_v27, 0.0 }
 0x324   :  { %v4543_v52 = vpop.eup %4542  ;;  %v3665_v7 = vsel %vm111_vm0, %v3644_v61, 0.0  ;;  %v3621_v3 = vmul.f32 %v3605_v30, %v3573_v17  ;;  %v147_v54 = vrot.slane %v146_v49, 2 }
 0x325   :  { %v4545_v55 = vpop.eup %4544  ;;  %v3666_v15 = vadd.f32 %v3665_v7, %v3664_v18  ;;  %v3647_v6 = vmul.f32 %v4543_v52, %v5319_v53  ;;  %v3620_v5 = vmul.f32 %v3604_v60, %v3572_v62 }
 0x326   :  { %v3646_v36 = vmul.f32 %v4545_v55, %v5321_v13  ;;  %4554 = vrcp.f32 %v3621_v3  ;;  %v148_v51 = vadd.f32 %v147_v54, %v146_v49 }
 0x327   :  { %4556 = vrcp.f32 %v3620_v5  ;;  %v3668_v20 = vadd.f32 %v3667_v10, %v3666_v15  ;;  %v3671_v11 = vsel %vm111_vm0, %v3647_v6, 0.0 }
 0x328   :  { %v4547_v4 = vpop.eup %4546  ;;  %v3669_v28 = vsel %vm111_vm0, %v3646_v36, 0.0  ;;  %v149_v46 = vrot.slane %v148_v51, 1 }
 0x329   :  { %v4549_v23 = vpop.eup %4548  ;;  %v3649_v63 = vmul.f32 %v4547_v4, %v5327_v19  ;;  %v3670_v39 = vadd.f32 %v3669_v28, %v3668_v20 }
 0x32a   :  { %v3648_v56 = vmul.f32 %v4549_v23, %v5329_v32 }
 0x32b   :  { %v3672_v53 = vadd.f32 %v3671_v11, %v3670_v39  ;;  %v3675_v37 = vsel %vm111_vm0, %v3649_v63, 0.0 }
 0x32c   :  { %v4551_v8 = vpop.eup %4550  ;;  %v3673_v34 = vsel %vm111_vm0, %v3648_v56, 0.0 }
 0x32d   :  { %v4553_v25 = vpop.eup %4552  ;;  %v3651_v13 = vmul.f32 %v4551_v8, %v5335_v0  ;;  %v3674_v21 = vadd.f32 %v3673_v34, %v3672_v53 }
 0x32e   :  { %v3650_v44 = vmul.f32 %v4553_v25, %v5337_v40 }
 0x32f   :  { %v3676_v45 = vadd.f32 %v3675_v37, %v3674_v21  ;;  %v3679_v50 = vsel %vm111_vm0, %v3651_v13, 0.0 }
 0x330   :  { %v4555_v47 = vpop.eup %4554  ;;  %v3677_v19 = vsel %vm111_vm0, %v3650_v44, 0.0 }
 0x331   :  { %v4557_v38 = vpop.eup %4556  ;;  %v3653_v32 = vmul.f32 %v4555_v47, %v5341_v58  ;;  %v3678_v48 = vadd.f32 %v3677_v19, %v3676_v45  ;;  %v150_v58 = vadd.f32 %v149_v46, %v148_v51 }
 0x332   :  { %v3652_v42 = vmul.f32 %v4557_v38, %v5344_v9 }
 0x333   :  { %v3680_v2 = vadd.f32 %v3679_v50, %v3678_v48  ;;  %v3683_v40 = vsel %vm111_vm0, %v3653_v32, 0.0  ;;  %4518 = vpush %v150_v58 }
 0x334   :  { %v3681_v0 = vsel %vm111_vm0, %v3652_v42, 0.0 }
 0x335   :  { %v3682_v22 = vadd.f32 %v3681_v0, %v3680_v2 }
 0x337   :  { %v3684_v43 = vadd.f32 %v3683_v40, %v3682_v22 }
 0x339   :  { %3685 = vadd.xlane.f32.xlu0 %v3684_v43 }
 0x364   :  { %s4519_s3 = spop %4518 }
 0x365   :  { %v3694_v9 = vstv %s4519_s3 }
 0x366   :  { %3695 = vst [vmem:[%s5417_s4] sm:$0xff] %v3694_v9 }
 0x3c6   :  { %v3686_v41 = vpop.xlane.xlu0 %3685 }
 0x3c7   :  { %v3687_v14 = vrot.slane %v3686_v41, 4 }
 0x3c9   :  { %v3688_v31 = vadd.f32 %v3687_v14, %v3686_v41 }
 0x3cb   :  { %v3689_v12 = vrot.slane %v3688_v31, 2 }
 0x3cd   :  { %v3690_v17 = vadd.f32 %v3689_v12, %v3688_v31 }
 0x3cf   :  { %v3691_v26 = vrot.slane %v3690_v17, 1 }
 0x3d1   :  { %v3692_v29 = vadd.f32 %v3691_v26, %v3690_v17 }
 0x3d3   :  { %4520 = vpush %v3692_v29 }
 0x404   :  { %s4521_s26 = spop %4520 }
 0x405   :  { %v3696_v59 = vstv %s4521_s26 }
 0x406   :  { %3697 = vst [vmem:[%s5418_s5] sm:$0xff] %v3696_v59 }
 0x407   :  { %3706 = vsyncpa [#allocation3], 1 }
 0x408   :  { %3707 = vsyncpa [#allocation5], 1 }

</bundles_post_ra>
